<compile_context>
chip_gen: v7x
topology: tpu7x:2x2x1
jax: 0.10.0
libtpu: 0.0.40
codegen_flags: <defaults>
</compile_context>

<pallas_src>
import functools

import jax
import jax.numpy as jnp
import numpy as np
from jax.experimental import pallas as pl
from jax.experimental.pallas import tpu as pltpu


# ----------------------------- Pallas kernel --------------------------------
def _gru_disc_kernel(x_ref, wih0_ref, wih_ref, whh_ref, gib_ref, bhn_ref,
                     fcw_ref, fcb_ref, out_ref, seq_ref, *,
                     num_layers, seq_len, batch, hidden):
    """GRU stack + FC + sigmoid, single grid point, everything in VMEM.

    x_ref   : (S*B, Dp)  f32   time-major input, flattened, features padded
    wih0_ref: (Dp, 3H)   bf16  layer-0 input->gate weights, gates packed [r|z|n]
    wih_ref : (max(L-1,1), H, 3H) bf16  deeper layers' input->gate weights
    whh_ref : (L, H, 3H)  bf16 hidden->gate weights, gates packed [r|z|n]
    gib_ref : (L, 1, 3H)  f32  packed bias: [bih_r+bhh_r | bih_z+bhh_z | bih_n]
    bhn_ref : (L, 1, H)   f32  bhh_n (must stay inside r * (...))
    fcw_ref : (1, H)      f32  final linear weight row (output_size == 1)
    fcb_ref : (1, 1)      f32  final linear bias
    out_ref : (B, S)      f32  sigmoid(fc(gru_out)), batch-major
    seq_ref : (S*B, H)    f32  scratch: previous layer's output sequence
    """
    S, B, H = seq_len, batch, hidden
    G = 3 * H

    fcw = fcw_ref[...]                                       # (1, H)
    fcb = fcb_ref[...]                                       # (1, 1)

    for layer in range(num_layers):                          # static layer loop
        last = layer == num_layers - 1

        # ---- per-layer prep, hoisted off the serial time loop --------------
        b_gi = gib_ref[layer]                                # (1, 3H)
        # bhh_n broadcast ONCE per layer (not per step).
        b_hn = jnp.broadcast_to(bhn_ref[layer], (B, H))      # (B, H)

        if layer == 0:
            x_all = x_ref[...]                               # (S*B, Dp) f32
            w_in = wih0_ref[...]                             # (Dp, 3H)  bf16
        else:
            # previous layer's full output (read before this layer writes)
            x_all = seq_ref[...]                             # (S*B, H)  f32
            w_in = wih_ref[layer - 1]                        # (H, 3H)   bf16

        # Input-side pre-activations for ALL timesteps & ALL gates:
        # ONE bf16 MXU matmul per layer, f32 accumulation, biases folded in.
        gi_all = (jnp.dot(x_all.astype(jnp.bfloat16), w_in,
                          preferred_element_type=jnp.float32)
                  + b_gi)                                    # (S*B, 3H) f32

        u = whh_ref[layer]                                   # (H, 3H) bf16

        # ---- serial recurrence: one fused h @ U dot + gate math per step ---
        h = jnp.zeros((B, H), jnp.float32)
        logits = []
        for t in range(S):                                   # static unroll
            gh = jnp.dot(h.astype(jnp.bfloat16), u,
                         preferred_element_type=jnp.float32)  # (B, 3H) f32
            gi = gi_all[t * B:(t + 1) * B, :]                 # static slice
            # gate math stays in f32 (v5e has no bf16 VPU/EUP path)
            r = jax.nn.sigmoid(gi[:, 0:H] + gh[:, 0:H])
            z = jax.nn.sigmoid(gi[:, H:2 * H] + gh[:, H:2 * H])
            n = jnp.tanh(gi[:, 2 * H:G] + r * (gh[:, 2 * H:G] + b_hn))
            h = (1.0 - z) * n + z * h
            if last:
                # FC (output_size == 1) folded into the step: VPU multiply +
                # lane reduction, no MXU tail, no seq_ref write-back.
                logits.append(jnp.sum(h * fcw, axis=-1, keepdims=True) + fcb)
            else:
                seq_ref[t * B:(t + 1) * B, :] = h            # static store

        if last:
            out_ref[...] = jax.nn.sigmoid(
                jnp.concatenate(logits, axis=1))             # (B, S)


# ------------------------------ wrapper --------------------------------------
def discriminator_forward(x, packed, *, hidden_size, num_layers):
    """x: (B, S, input_size) float32 -> (B*S,) float32, like output.view(B*S)."""
    B, S, D = x.shape
    H = hidden_size
    Dp = packed["wih0"].shape[0]

    # glue: time-major, pad features to a sublane multiple, flatten to 2-D
    x_tm = jnp.transpose(x, (1, 0, 2)).astype(jnp.float32)   # (S, B, D)
    x_flat = jnp.pad(x_tm, ((0, 0), (0, 0), (0, Dp - D))).reshape(S * B, Dp)

    out = pl.pallas_call(
        functools.partial(_gru_disc_kernel, num_layers=num_layers,
                          seq_len=S, batch=B, hidden=H),
        out_shape=jax.ShapeDtypeStruct((B, S), jnp.float32),
        scratch_shapes=[pltpu.VMEM((S * B, H), jnp.float32)],   # seq buffer
    )(x_flat, packed["wih0"], packed["wih"], packed["whh"],
      packed["gib"], packed["bhn"], packed["fcw"], packed["fcb"])

    return out.reshape(B * S)                                  # batch-major


# ------------------------- deterministic params -------------------------------
def init_params(key, input_size, hidden_size, num_layers, output_size):
    """Canonical per-gate f32 parameters (PyTorch GRU gate order [r, z, n])."""
    assert output_size == 1, "output.view(B*S) in the spec implies output_size==1"
    H = hidden_size
    k = 1.0 / np.sqrt(H)
    keys = jax.random.split(key, 4 * num_layers + 2)
    wih, whh, bih, bhh = [], [], [], []
    for layer in range(num_layers):
        kw_i, kw_h, kb_i, kb_h = keys[4 * layer: 4 * layer + 4]
        in_dim = input_size if layer == 0 else H
        wih.append(jax.random.uniform(kw_i, (3, in_dim, H), jnp.float32, -k, k))
        whh.append(jax.random.uniform(kw_h, (3, H, H), jnp.float32, -k, k))
        bih.append(jax.random.uniform(kb_i, (3, H), jnp.float32, -k, k))
        bhh.append(jax.random.uniform(kb_h, (3, H), jnp.float32, -k, k))
    fcw = jax.random.uniform(keys[-2], (1, H), jnp.float32, -k, k)
    fcb = jax.random.uniform(keys[-1], (1, 1), jnp.float32, -k, k)
    return {"wih": wih, "whh": whh, "bih": bih, "bhh": bhh,
            "fcw": fcw, "fcb": fcb}


def pack_params(params, *, input_size, hidden_size, num_layers):
    """Lane-pack gates into (K, 3H) slabs, fold biases, pre-cast MXU weights."""
    H = hidden_size
    Dp = ((input_size + 7) // 8) * 8                  # pad features to x8
    w0 = params["wih"][0]                             # (3, D, H)
    w0 = jnp.pad(w0, ((0, 0), (0, Dp - input_size), (0, 0)))
    wih0_p = jnp.concatenate([w0[0], w0[1], w0[2]], axis=1)        # (Dp, 3H)
    if num_layers > 1:
        wih_p = jnp.stack(
            [jnp.concatenate([params["wih"][l][g] for g in range(3)], axis=1)
             for l in range(1, num_layers)])                       # (L-1, H, 3H)
    else:
        wih_p = jnp.zeros((1, H, 3 * H), jnp.float32)              # dummy
    whh_p = jnp.stack(
        [jnp.concatenate([params["whh"][l][g] for g in range(3)], axis=1)
         for l in range(num_layers)])                              # (L, H, 3H)
    gib = jnp.stack(
        [jnp.concatenate([params["bih"][l][0] + params["bhh"][l][0],
                          params["bih"][l][1] + params["bhh"][l][1],
                          params["bih"][l][2]])[None, :]
         for l in range(num_layers)])                              # (L, 1, 3H)
    bhn = jnp.stack([params["bhh"][l][2][None, :]
                     for l in range(num_layers)])                  # (L, 1, H)
    return {"wih0": wih0_p.astype(jnp.bfloat16),
            "wih": wih_p.astype(jnp.bfloat16),
            "whh": whh_p.astype(jnp.bfloat16),
            "gib": gib, "bhn": bhn,
            "fcw": params["fcw"], "fcb": params["fcb"]}


# ---------------------------- pure-JAX reference ------------------------------
def reference_forward(x, params, *, hidden_size, num_layers):
    """All-f32 reference (standard PyTorch GRU equations, batch_first)."""
    B, S, D = x.shape
    H = hidden_size
    inp = jnp.transpose(x, (1, 0, 2)).astype(jnp.float32)   # (S, B, D)
    for layer in range(num_layers):
        w = params["wih"][layer]                            # (3, in, H)
        u = params["whh"][layer]                            # (3, H, H)
        bi = params["bih"][layer]                           # (3, H)
        bh = params["bhh"][layer]                           # (3, H)
        h = jnp.zeros((B, H), jnp.float32)
        outs = []
        for t in range(S):
            x_t = inp[t]
            r = jax.nn.sigmoid(x_t @ w[0] + bi[0] + h @ u[0] + bh[0])
            z = jax.nn.sigmoid(x_t @ w[1] + bi[1] + h @ u[1] + bh[1])
            n = jnp.tanh(x_t @ w[2] + bi[2] + r * (h @ u[2] + bh[2]))
            h = (1.0 - z) * n + z * h
            outs.append(h)
        inp = jnp.stack(outs, axis=0)                       # (S, B, H)
    logits = jnp.einsum('sbh,h->sb', inp, params["fcw"][0]) + params["fcb"][0, 0]
    return jnp.transpose(jax.nn.sigmoid(logits), (1, 0)).reshape(B * S)


# --------------------------------- main ---------------------------------------
if __name__ == "__main__":
    INPUT_SIZE, HIDDEN_SIZE, NUM_LAYERS, OUTPUT_SIZE = 4, 32, 2, 1
    B, S = 2, 8

    key = jax.random.PRNGKey(0)
    k_x, k_p = jax.random.split(key)
    x = jax.random.normal(k_x, (B, S, INPUT_SIZE), jnp.float32)
    params = init_params(k_p, INPUT_SIZE, HIDDEN_SIZE, NUM_LAYERS, OUTPUT_SIZE)
    packed = pack_params(params, input_size=INPUT_SIZE,
                         hidden_size=HIDDEN_SIZE, num_layers=NUM_LAYERS)

    out = discriminator_forward(x, packed,
                                hidden_size=HIDDEN_SIZE, num_layers=NUM_LAYERS)
    out = jax.block_until_ready(out)

    ref = reference_forward(x, params,
                            hidden_size=HIDDEN_SIZE, num_layers=NUM_LAYERS)
    # Tolerance sized for bf16 MXU inputs (f32 accumulation, f32 gate math,
    # sigmoid-squashed output); an all-f32 build of this kernel matches to ~1e-6.
    np.testing.assert_allclose(np.asarray(out), np.asarray(ref),
                               rtol=2e-2, atol=2e-2)
    assert out.shape == (B * S,)
    print("KERNEL_OK")
</pallas_src>

<mosaic_0001>
module attributes {stable_mosaic.version = 11 : i64} {
  func.func @_gru_disc_kernel(%arg0: memref<16x8xf32, #tpu.memory_space<vmem>>, %arg1: memref<8x96xbf16, #tpu.memory_space<vmem>>, %arg2: memref<1x32x96xbf16, #tpu.memory_space<vmem>>, %arg3: memref<2x32x96xbf16, #tpu.memory_space<vmem>>, %arg4: memref<2x1x96xf32, #tpu.memory_space<vmem>>, %arg5: memref<2x1x32xf32, #tpu.memory_space<vmem>>, %arg6: memref<1x32xf32, #tpu.memory_space<vmem>>, %arg7: memref<1x1xf32, #tpu.memory_space<vmem>>, %arg8: memref<2x8xf32, #tpu.memory_space<vmem>>, %arg9: memref<16x32xf32, #tpu.memory_space<vmem>>) attributes {dimension_semantics = [], scalar_prefetch = 0 : i64, scratch_operands = 1 : i64, tpu.core_type = #tpu.core_type<tc>} {
    %c0 = arith.constant 0 : index
    %c0_0 = arith.constant 0 : index
    %0 = vector.load %arg6[%c0, %c0_0] : memref<1x32xf32, #tpu.memory_space<vmem>>, vector<1x32xf32>
    %c0_1 = arith.constant 0 : index
    %c0_2 = arith.constant 0 : index
    %1 = vector.load %arg7[%c0_1, %c0_2] : memref<1x1xf32, #tpu.memory_space<vmem>>, vector<1x1xf32>
    %c0_3 = arith.constant 0 : index
    %c0_4 = arith.constant 0 : index
    %c0_5 = arith.constant 0 : index
    %2 = vector.load %arg4[%c0_3, %c0_4, %c0_5] : memref<2x1x96xf32, #tpu.memory_space<vmem>>, vector<1x1x96xf32>
    %3 = vector.shape_cast %2 : vector<1x1x96xf32> to vector<1x96xf32>
    %c0_6 = arith.constant 0 : index
    %c0_7 = arith.constant 0 : index
    %c0_8 = arith.constant 0 : index
    %4 = vector.load %arg5[%c0_6, %c0_7, %c0_8] : memref<2x1x32xf32, #tpu.memory_space<vmem>>, vector<1x1x32xf32>
    %5 = vector.shape_cast %4 : vector<1x1x32xf32> to vector<1x32xf32>
    %6 = vector.shape_cast %5 : vector<1x32xf32> to vector<1x32xf32>
    %7 = vector.broadcast %6 : vector<1x32xf32> to vector<2x32xf32>
    %c0_9 = arith.constant 0 : index
    %c0_10 = arith.constant 0 : index
    %8 = vector.load %arg0[%c0_9, %c0_10] : memref<16x8xf32, #tpu.memory_space<vmem>>, vector<16x8xf32>
    %c0_11 = arith.constant 0 : index
    %c0_12 = arith.constant 0 : index
    %9 = vector.load %arg1[%c0_11, %c0_12] : memref<8x96xbf16, #tpu.memory_space<vmem>>, vector<8x96xbf16>
    %10 = arith.truncf %8 : vector<16x8xf32> to vector<16x8xbf16>
    %cst = arith.constant dense<0.000000e+00> : vector<16x96xf32>
    %11 = tpu.matmul %10, %9, %cst {dimension_numbers = #tpu.dot_dimension_numbers<[1], [0], [0], [1], [0, 0, 1, 1], [], []>} : vector<16x8xbf16>, vector<8x96xbf16>, vector<16x96xf32> -> vector<16x96xf32>
    %12 = vector.broadcast %3 : vector<1x96xf32> to vector<16x96xf32>
    %13 = arith.addf %11, %12 : vector<16x96xf32>
    %c0_13 = arith.constant 0 : index
    %c0_14 = arith.constant 0 : index
    %c0_15 = arith.constant 0 : index
    %14 = vector.load %arg3[%c0_13, %c0_14, %c0_15] : memref<2x32x96xbf16, #tpu.memory_space<vmem>>, vector<1x32x96xbf16>
    %15 = vector.shape_cast %14 : vector<1x32x96xbf16> to vector<32x96xbf16>
    %cst_16 = arith.constant 0.000000e+00 : f32
    %16 = vector.broadcast %cst_16 : f32 to vector<2x32xf32>
    %17 = arith.truncf %16 : vector<2x32xf32> to vector<2x32xbf16>
    %cst_17 = arith.constant dense<0.000000e+00> : vector<2x96xf32>
    %18 = tpu.matmul %17, %15, %cst_17 {dimension_numbers = #tpu.dot_dimension_numbers<[1], [0], [0], [1], [0, 0, 1, 1], [], []>} : vector<2x32xbf16>, vector<32x96xbf16>, vector<2x96xf32> -> vector<2x96xf32>
    %19 = vector.extract_strided_slice %13 {offsets = [0, 0], sizes = [2, 96], strides = [1, 1]} : vector<16x96xf32> to vector<2x96xf32>
    %20 = vector.extract_strided_slice %19 {offsets = [0, 0], sizes = [2, 32], strides = [1, 1]} : vector<2x96xf32> to vector<2x32xf32>
    %21 = vector.extract_strided_slice %18 {offsets = [0, 0], sizes = [2, 32], strides = [1, 1]} : vector<2x96xf32> to vector<2x32xf32>
    %22 = arith.addf %20, %21 : vector<2x32xf32>
    %23 = arith.negf %22 : vector<2x32xf32>
    %24 = math.exp %23 : vector<2x32xf32>
    %cst_18 = arith.constant 1.000000e+00 : f32
    %25 = vector.broadcast %cst_18 : f32 to vector<2x32xf32>
    %26 = arith.addf %25, %24 : vector<2x32xf32>
    %27 = arith.divf %25, %26 : vector<2x32xf32>
    %28 = vector.extract_strided_slice %19 {offsets = [0, 32], sizes = [2, 32], strides = [1, 1]} : vector<2x96xf32> to vector<2x32xf32>
    %29 = vector.extract_strided_slice %18 {offsets = [0, 32], sizes = [2, 32], strides = [1, 1]} : vector<2x96xf32> to vector<2x32xf32>
    %30 = arith.addf %28, %29 : vector<2x32xf32>
    %31 = arith.negf %30 : vector<2x32xf32>
    %32 = math.exp %31 : vector<2x32xf32>
    %cst_19 = arith.constant 1.000000e+00 : f32
    %33 = vector.broadcast %cst_19 : f32 to vector<2x32xf32>
    %34 = arith.addf %33, %32 : vector<2x32xf32>
    %35 = arith.divf %33, %34 : vector<2x32xf32>
    %36 = vector.extract_strided_slice %19 {offsets = [0, 64], sizes = [2, 32], strides = [1, 1]} : vector<2x96xf32> to vector<2x32xf32>
    %37 = vector.extract_strided_slice %18 {offsets = [0, 64], sizes = [2, 32], strides = [1, 1]} : vector<2x96xf32> to vector<2x32xf32>
    %38 = arith.addf %37, %7 : vector<2x32xf32>
    %39 = arith.mulf %27, %38 : vector<2x32xf32>
    %40 = arith.addf %36, %39 : vector<2x32xf32>
    %41 = math.tanh %40 : vector<2x32xf32>
    %cst_20 = arith.constant 1.000000e+00 : f32
    %42 = vector.broadcast %cst_20 : f32 to vector<2x32xf32>
    %43 = arith.subf %42, %35 : vector<2x32xf32>
    %44 = arith.mulf %43, %41 : vector<2x32xf32>
    %45 = arith.mulf %35, %16 : vector<2x32xf32>
    %46 = arith.addf %44, %45 : vector<2x32xf32>
    %c0_21 = arith.constant 0 : index
    %c0_22 = arith.constant 0 : index
    %47 = vector.load %arg9[%c0_21, %c0_22] : memref<16x32xf32, #tpu.memory_space<vmem>>, vector<2x32xf32>
    tpu.vector_store %arg9[%c0_21, %c0_22], %46 {strides = array<i32>} : memref<16x32xf32, #tpu.memory_space<vmem>>, vector<2x32xf32>,
    %48 = arith.truncf %46 : vector<2x32xf32> to vector<2x32xbf16>
    %cst_23 = arith.constant dense<0.000000e+00> : vector<2x96xf32>
    %49 = tpu.matmul %48, %15, %cst_23 {dimension_numbers = #tpu.dot_dimension_numbers<[1], [0], [0], [1], [0, 0, 1, 1], [], []>} : vector<2x32xbf16>, vector<32x96xbf16>, vector<2x96xf32> -> vector<2x96xf32>
    %50 = vector.extract_strided_slice %13 {offsets = [2, 0], sizes = [2, 96], strides = [1, 1]} : vector<16x96xf32> to vector<2x96xf32>
    %51 = vector.extract_strided_slice %50 {offsets = [0, 0], sizes = [2, 32], strides = [1, 1]} : vector<2x96xf32> to vector<2x32xf32>
    %52 = vector.extract_strided_slice %49 {offsets = [0, 0], sizes = [2, 32], strides = [1, 1]} : vector<2x96xf32> to vector<2x32xf32>
    %53 = arith.addf %51, %52 : vector<2x32xf32>
    %54 = arith.negf %53 : vector<2x32xf32>
    %55 = math.exp %54 : vector<2x32xf32>
    %cst_24 = arith.constant 1.000000e+00 : f32
    %56 = vector.broadcast %cst_24 : f32 to vector<2x32xf32>
    %57 = arith.addf %56, %55 : vector<2x32xf32>
    %58 = arith.divf %56, %57 : vector<2x32xf32>
    %59 = vector.extract_strided_slice %50 {offsets = [0, 32], sizes = [2, 32], strides = [1, 1]} : vector<2x96xf32> to vector<2x32xf32>
    %60 = vector.extract_strided_slice %49 {offsets = [0, 32], sizes = [2, 32], strides = [1, 1]} : vector<2x96xf32> to vector<2x32xf32>
    %61 = arith.addf %59, %60 : vector<2x32xf32>
    %62 = arith.negf %61 : vector<2x32xf32>
    %63 = math.exp %62 : vector<2x32xf32>
    %cst_25 = arith.constant 1.000000e+00 : f32
    %64 = vector.broadcast %cst_25 : f32 to vector<2x32xf32>
    %65 = arith.addf %64, %63 : vector<2x32xf32>
    %66 = arith.divf %64, %65 : vector<2x32xf32>
    %67 = vector.extract_strided_slice %50 {offsets = [0, 64], sizes = [2, 32], strides = [1, 1]} : vector<2x96xf32> to vector<2x32xf32>
    %68 = vector.extract_strided_slice %49 {offsets = [0, 64], sizes = [2, 32], strides = [1, 1]} : vector<2x96xf32> to vector<2x32xf32>
    %69 = arith.addf %68, %7 : vector<2x32xf32>
    %70 = arith.mulf %58, %69 : vector<2x32xf32>
    %71 = arith.addf %67, %70 : vector<2x32xf32>
    %72 = math.tanh %71 : vector<2x32xf32>
    %cst_26 = arith.constant 1.000000e+00 : f32
    %73 = vector.broadcast %cst_26 : f32 to vector<2x32xf32>
    %74 = arith.subf %73, %66 : vector<2x32xf32>
    %75 = arith.mulf %74, %72 : vector<2x32xf32>
    %76 = arith.mulf %66, %46 : vector<2x32xf32>
    %77 = arith.addf %75, %76 : vector<2x32xf32>
    %c2 = arith.constant 2 : index
    %c0_27 = arith.constant 0 : index
    %78 = vector.load %arg9[%c2, %c0_27] : memref<16x32xf32, #tpu.memory_space<vmem>>, vector<2x32xf32>
    tpu.vector_store %arg9[%c2, %c0_27], %77 {strides = array<i32>} : memref<16x32xf32, #tpu.memory_space<vmem>>, vector<2x32xf32>,
    %79 = arith.truncf %77 : vector<2x32xf32> to vector<2x32xbf16>
    %cst_28 = arith.constant dense<0.000000e+00> : vector<2x96xf32>
    %80 = tpu.matmul %79, %15, %cst_28 {dimension_numbers = #tpu.dot_dimension_numbers<[1], [0], [0], [1], [0, 0, 1, 1], [], []>} : vector<2x32xbf16>, vector<32x96xbf16>, vector<2x96xf32> -> vector<2x96xf32>
    %81 = vector.extract_strided_slice %13 {offsets = [4, 0], sizes = [2, 96], strides = [1, 1]} : vector<16x96xf32> to vector<2x96xf32>
    %82 = vector.extract_strided_slice %81 {offsets = [0, 0], sizes = [2, 32], strides = [1, 1]} : vector<2x96xf32> to vector<2x32xf32>
    %83 = vector.extract_strided_slice %80 {offsets = [0, 0], sizes = [2, 32], strides = [1, 1]} : vector<2x96xf32> to vector<2x32xf32>
    %84 = arith.addf %82, %83 : vector<2x32xf32>
    %85 = arith.negf %84 : vector<2x32xf32>
    %86 = math.exp %85 : vector<2x32xf32>
    %cst_29 = arith.constant 1.000000e+00 : f32
    %87 = vector.broadcast %cst_29 : f32 to vector<2x32xf32>
    %88 = arith.addf %87, %86 : vector<2x32xf32>
    %89 = arith.divf %87, %88 : vector<2x32xf32>
    %90 = vector.extract_strided_slice %81 {offsets = [0, 32], sizes = [2, 32], strides = [1, 1]} : vector<2x96xf32> to vector<2x32xf32>
    %91 = vector.extract_strided_slice %80 {offsets = [0, 32], sizes = [2, 32], strides = [1, 1]} : vector<2x96xf32> to vector<2x32xf32>
    %92 = arith.addf %90, %91 : vector<2x32xf32>
    %93 = arith.negf %92 : vector<2x32xf32>
    %94 = math.exp %93 : vector<2x32xf32>
    %cst_30 = arith.constant 1.000000e+00 : f32
    %95 = vector.broadcast %cst_30 : f32 to vector<2x32xf32>
    %96 = arith.addf %95, %94 : vector<2x32xf32>
    %97 = arith.divf %95, %96 : vector<2x32xf32>
    %98 = vector.extract_strided_slice %81 {offsets = [0, 64], sizes = [2, 32], strides = [1, 1]} : vector<2x96xf32> to vector<2x32xf32>
    %99 = vector.extract_strided_slice %80 {offsets = [0, 64], sizes = [2, 32], strides = [1, 1]} : vector<2x96xf32> to vector<2x32xf32>
    %100 = arith.addf %99, %7 : vector<2x32xf32>
    %101 = arith.mulf %89, %100 : vector<2x32xf32>
    %102 = arith.addf %98, %101 : vector<2x32xf32>
    %103 = math.tanh %102 : vector<2x32xf32>
    %cst_31 = arith.constant 1.000000e+00 : f32
    %104 = vector.broadcast %cst_31 : f32 to vector<2x32xf32>
    %105 = arith.subf %104, %97 : vector<2x32xf32>
    %106 = arith.mulf %105, %103 : vector<2x32xf32>
    %107 = arith.mulf %97, %77 : vector<2x32xf32>
    %108 = arith.addf %106, %107 : vector<2x32xf32>
    %c4 = arith.constant 4 : index
    %c0_32 = arith.constant 0 : index
    %109 = vector.load %arg9[%c4, %c0_32] : memref<16x32xf32, #tpu.memory_space<vmem>>, vector<2x32xf32>
    tpu.vector_store %arg9[%c4, %c0_32], %108 {strides = array<i32>} : memref<16x32xf32, #tpu.memory_space<vmem>>, vector<2x32xf32>,
    %110 = arith.truncf %108 : vector<2x32xf32> to vector<2x32xbf16>
    %cst_33 = arith.constant dense<0.000000e+00> : vector<2x96xf32>
    %111 = tpu.matmul %110, %15, %cst_33 {dimension_numbers = #tpu.dot_dimension_numbers<[1], [0], [0], [1], [0, 0, 1, 1], [], []>} : vector<2x32xbf16>, vector<32x96xbf16>, vector<2x96xf32> -> vector<2x96xf32>
    %112 = vector.extract_strided_slice %13 {offsets = [6, 0], sizes = [2, 96], strides = [1, 1]} : vector<16x96xf32> to vector<2x96xf32>
    %113 = vector.extract_strided_slice %112 {offsets = [0, 0], sizes = [2, 32], strides = [1, 1]} : vector<2x96xf32> to vector<2x32xf32>
    %114 = vector.extract_strided_slice %111 {offsets = [0, 0], sizes = [2, 32], strides = [1, 1]} : vector<2x96xf32> to vector<2x32xf32>
    %115 = arith.addf %113, %114 : vector<2x32xf32>
    %116 = arith.negf %115 : vector<2x32xf32>
    %117 = math.exp %116 : vector<2x32xf32>
    %cst_34 = arith.constant 1.000000e+00 : f32
    %118 = vector.broadcast %cst_34 : f32 to vector<2x32xf32>
    %119 = arith.addf %118, %117 : vector<2x32xf32>
    %120 = arith.divf %118, %119 : vector<2x32xf32>
    %121 = vector.extract_strided_slice %112 {offsets = [0, 32], sizes = [2, 32], strides = [1, 1]} : vector<2x96xf32> to vector<2x32xf32>
    %122 = vector.extract_strided_slice %111 {offsets = [0, 32], sizes = [2, 32], strides = [1, 1]} : vector<2x96xf32> to vector<2x32xf32>
    %123 = arith.addf %121, %122 : vector<2x32xf32>
    %124 = arith.negf %123 : vector<2x32xf32>
    %125 = math.exp %124 : vector<2x32xf32>
    %cst_35 = arith.constant 1.000000e+00 : f32
    %126 = vector.broadcast %cst_35 : f32 to vector<2x32xf32>
    %127 = arith.addf %126, %125 : vector<2x32xf32>
    %128 = arith.divf %126, %127 : vector<2x32xf32>
    %129 = vector.extract_strided_slice %112 {offsets = [0, 64], sizes = [2, 32], strides = [1, 1]} : vector<2x96xf32> to vector<2x32xf32>
    %130 = vector.extract_strided_slice %111 {offsets = [0, 64], sizes = [2, 32], strides = [1, 1]} : vector<2x96xf32> to vector<2x32xf32>
    %131 = arith.addf %130, %7 : vector<2x32xf32>
    %132 = arith.mulf %120, %131 : vector<2x32xf32>
    %133 = arith.addf %129, %132 : vector<2x32xf32>
    %134 = math.tanh %133 : vector<2x32xf32>
    %cst_36 = arith.constant 1.000000e+00 : f32
    %135 = vector.broadcast %cst_36 : f32 to vector<2x32xf32>
    %136 = arith.subf %135, %128 : vector<2x32xf32>
    %137 = arith.mulf %136, %134 : vector<2x32xf32>
    %138 = arith.mulf %128, %108 : vector<2x32xf32>
    %139 = arith.addf %137, %138 : vector<2x32xf32>
    %c6 = arith.constant 6 : index
    %c0_37 = arith.constant 0 : index
    %140 = vector.load %arg9[%c6, %c0_37] : memref<16x32xf32, #tpu.memory_space<vmem>>, vector<2x32xf32>
    tpu.vector_store %arg9[%c6, %c0_37], %139 {strides = array<i32>} : memref<16x32xf32, #tpu.memory_space<vmem>>, vector<2x32xf32>,
    %141 = arith.truncf %139 : vector<2x32xf32> to vector<2x32xbf16>
    %cst_38 = arith.constant dense<0.000000e+00> : vector<2x96xf32>
    %142 = tpu.matmul %141, %15, %cst_38 {dimension_numbers = #tpu.dot_dimension_numbers<[1], [0], [0], [1], [0, 0, 1, 1], [], []>} : vector<2x32xbf16>, vector<32x96xbf16>, vector<2x96xf32> -> vector<2x96xf32>
    %143 = vector.extract_strided_slice %13 {offsets = [8, 0], sizes = [2, 96], strides = [1, 1]} : vector<16x96xf32> to vector<2x96xf32>
    %144 = vector.extract_strided_slice %143 {offsets = [0, 0], sizes = [2, 32], strides = [1, 1]} : vector<2x96xf32> to vector<2x32xf32>
    %145 = vector.extract_strided_slice %142 {offsets = [0, 0], sizes = [2, 32], strides = [1, 1]} : vector<2x96xf32> to vector<2x32xf32>
    %146 = arith.addf %144, %145 : vector<2x32xf32>
    %147 = arith.negf %146 : vector<2x32xf32>
    %148 = math.exp %147 : vector<2x32xf32>
    %cst_39 = arith.constant 1.000000e+00 : f32
    %149 = vector.broadcast %cst_39 : f32 to vector<2x32xf32>
    %150 = arith.addf %149, %148 : vector<2x32xf32>
    %151 = arith.divf %149, %150 : vector<2x32xf32>
    %152 = vector.extract_strided_slice %143 {offsets = [0, 32], sizes = [2, 32], strides = [1, 1]} : vector<2x96xf32> to vector<2x32xf32>
    %153 = vector.extract_strided_slice %142 {offsets = [0, 32], sizes = [2, 32], strides = [1, 1]} : vector<2x96xf32> to vector<2x32xf32>
    %154 = arith.addf %152, %153 : vector<2x32xf32>
    %155 = arith.negf %154 : vector<2x32xf32>
    %156 = math.exp %155 : vector<2x32xf32>
    %cst_40 = arith.constant 1.000000e+00 : f32
    %157 = vector.broadcast %cst_40 : f32 to vector<2x32xf32>
    %158 = arith.addf %157, %156 : vector<2x32xf32>
    %159 = arith.divf %157, %158 : vector<2x32xf32>
    %160 = vector.extract_strided_slice %143 {offsets = [0, 64], sizes = [2, 32], strides = [1, 1]} : vector<2x96xf32> to vector<2x32xf32>
    %161 = vector.extract_strided_slice %142 {offsets = [0, 64], sizes = [2, 32], strides = [1, 1]} : vector<2x96xf32> to vector<2x32xf32>
    %162 = arith.addf %161, %7 : vector<2x32xf32>
    %163 = arith.mulf %151, %162 : vector<2x32xf32>
    %164 = arith.addf %160, %163 : vector<2x32xf32>
    %165 = math.tanh %164 : vector<2x32xf32>
    %cst_41 = arith.constant 1.000000e+00 : f32
    %166 = vector.broadcast %cst_41 : f32 to vector<2x32xf32>
    %167 = arith.subf %166, %159 : vector<2x32xf32>
    %168 = arith.mulf %167, %165 : vector<2x32xf32>
    %169 = arith.mulf %159, %139 : vector<2x32xf32>
    %170 = arith.addf %168, %169 : vector<2x32xf32>
    %c8 = arith.constant 8 : index
    %c0_42 = arith.constant 0 : index
    %171 = vector.load %arg9[%c8, %c0_42] : memref<16x32xf32, #tpu.memory_space<vmem>>, vector<2x32xf32>
    tpu.vector_store %arg9[%c8, %c0_42], %170 {strides = array<i32>} : memref<16x32xf32, #tpu.memory_space<vmem>>, vector<2x32xf32>,
    %172 = arith.truncf %170 : vector<2x32xf32> to vector<2x32xbf16>
    %cst_43 = arith.constant dense<0.000000e+00> : vector<2x96xf32>
    %173 = tpu.matmul %172, %15, %cst_43 {dimension_numbers = #tpu.dot_dimension_numbers<[1], [0], [0], [1], [0, 0, 1, 1], [], []>} : vector<2x32xbf16>, vector<32x96xbf16>, vector<2x96xf32> -> vector<2x96xf32>
    %174 = vector.extract_strided_slice %13 {offsets = [10, 0], sizes = [2, 96], strides = [1, 1]} : vector<16x96xf32> to vector<2x96xf32>
    %175 = vector.extract_strided_slice %174 {offsets = [0, 0], sizes = [2, 32], strides = [1, 1]} : vector<2x96xf32> to vector<2x32xf32>
    %176 = vector.extract_strided_slice %173 {offsets = [0, 0], sizes = [2, 32], strides = [1, 1]} : vector<2x96xf32> to vector<2x32xf32>
    %177 = arith.addf %175, %176 : vector<2x32xf32>
    %178 = arith.negf %177 : vector<2x32xf32>
    %179 = math.exp %178 : vector<2x32xf32>
    %cst_44 = arith.constant 1.000000e+00 : f32
    %180 = vector.broadcast %cst_44 : f32 to vector<2x32xf32>
    %181 = arith.addf %180, %179 : vector<2x32xf32>
    %182 = arith.divf %180, %181 : vector<2x32xf32>
    %183 = vector.extract_strided_slice %174 {offsets = [0, 32], sizes = [2, 32], strides = [1, 1]} : vector<2x96xf32> to vector<2x32xf32>
    %184 = vector.extract_strided_slice %173 {offsets = [0, 32], sizes = [2, 32], strides = [1, 1]} : vector<2x96xf32> to vector<2x32xf32>
    %185 = arith.addf %183, %184 : vector<2x32xf32>
    %186 = arith.negf %185 : vector<2x32xf32>
    %187 = math.exp %186 : vector<2x32xf32>
    %cst_45 = arith.constant 1.000000e+00 : f32
    %188 = vector.broadcast %cst_45 : f32 to vector<2x32xf32>
    %189 = arith.addf %188, %187 : vector<2x32xf32>
    %190 = arith.divf %188, %189 : vector<2x32xf32>
    %191 = vector.extract_strided_slice %174 {offsets = [0, 64], sizes = [2, 32], strides = [1, 1]} : vector<2x96xf32> to vector<2x32xf32>
    %192 = vector.extract_strided_slice %173 {offsets = [0, 64], sizes = [2, 32], strides = [1, 1]} : vector<2x96xf32> to vector<2x32xf32>
    %193 = arith.addf %192, %7 : vector<2x32xf32>
    %194 = arith.mulf %182, %193 : vector<2x32xf32>
    %195 = arith.addf %191, %194 : vector<2x32xf32>
    %196 = math.tanh %195 : vector<2x32xf32>
    %cst_46 = arith.constant 1.000000e+00 : f32
    %197 = vector.broadcast %cst_46 : f32 to vector<2x32xf32>
    %198 = arith.subf %197, %190 : vector<2x32xf32>
    %199 = arith.mulf %198, %196 : vector<2x32xf32>
    %200 = arith.mulf %190, %170 : vector<2x32xf32>
    %201 = arith.addf %199, %200 : vector<2x32xf32>
    %c10 = arith.constant 10 : index
    %c0_47 = arith.constant 0 : index
    %202 = vector.load %arg9[%c10, %c0_47] : memref<16x32xf32, #tpu.memory_space<vmem>>, vector<2x32xf32>
    tpu.vector_store %arg9[%c10, %c0_47], %201 {strides = array<i32>} : memref<16x32xf32, #tpu.memory_space<vmem>>, vector<2x32xf32>,
    %203 = arith.truncf %201 : vector<2x32xf32> to vector<2x32xbf16>
    %cst_48 = arith.constant dense<0.000000e+00> : vector<2x96xf32>
    %204 = tpu.matmul %203, %15, %cst_48 {dimension_numbers = #tpu.dot_dimension_numbers<[1], [0], [0], [1], [0, 0, 1, 1], [], []>} : vector<2x32xbf16>, vector<32x96xbf16>, vector<2x96xf32> -> vector<2x96xf32>
    %205 = vector.extract_strided_slice %13 {offsets = [12, 0], sizes = [2, 96], strides = [1, 1]} : vector<16x96xf32> to vector<2x96xf32>
    %206 = vector.extract_strided_slice %205 {offsets = [0, 0], sizes = [2, 32], strides = [1, 1]} : vector<2x96xf32> to vector<2x32xf32>
    %207 = vector.extract_strided_slice %204 {offsets = [0, 0], sizes = [2, 32], strides = [1, 1]} : vector<2x96xf32> to vector<2x32xf32>
    %208 = arith.addf %206, %207 : vector<2x32xf32>
    %209 = arith.negf %208 : vector<2x32xf32>
    %210 = math.exp %209 : vector<2x32xf32>
    %cst_49 = arith.constant 1.000000e+00 : f32
    %211 = vector.broadcast %cst_49 : f32 to vector<2x32xf32>
    %212 = arith.addf %211, %210 : vector<2x32xf32>
    %213 = arith.divf %211, %212 : vector<2x32xf32>
    %214 = vector.extract_strided_slice %205 {offsets = [0, 32], sizes = [2, 32], strides = [1, 1]} : vector<2x96xf32> to vector<2x32xf32>
    %215 = vector.extract_strided_slice %204 {offsets = [0, 32], sizes = [2, 32], strides = [1, 1]} : vector<2x96xf32> to vector<2x32xf32>
    %216 = arith.addf %214, %215 : vector<2x32xf32>
    %217 = arith.negf %216 : vector<2x32xf32>
    %218 = math.exp %217 : vector<2x32xf32>
    %cst_50 = arith.constant 1.000000e+00 : f32
    %219 = vector.broadcast %cst_50 : f32 to vector<2x32xf32>
    %220 = arith.addf %219, %218 : vector<2x32xf32>
    %221 = arith.divf %219, %220 : vector<2x32xf32>
    %222 = vector.extract_strided_slice %205 {offsets = [0, 64], sizes = [2, 32], strides = [1, 1]} : vector<2x96xf32> to vector<2x32xf32>
    %223 = vector.extract_strided_slice %204 {offsets = [0, 64], sizes = [2, 32], strides = [1, 1]} : vector<2x96xf32> to vector<2x32xf32>
    %224 = arith.addf %223, %7 : vector<2x32xf32>
    %225 = arith.mulf %213, %224 : vector<2x32xf32>
    %226 = arith.addf %222, %225 : vector<2x32xf32>
    %227 = math.tanh %226 : vector<2x32xf32>
    %cst_51 = arith.constant 1.000000e+00 : f32
    %228 = vector.broadcast %cst_51 : f32 to vector<2x32xf32>
    %229 = arith.subf %228, %221 : vector<2x32xf32>
    %230 = arith.mulf %229, %227 : vector<2x32xf32>
    %231 = arith.mulf %221, %201 : vector<2x32xf32>
    %232 = arith.addf %230, %231 : vector<2x32xf32>
    %c12 = arith.constant 12 : index
    %c0_52 = arith.constant 0 : index
    %233 = vector.load %arg9[%c12, %c0_52] : memref<16x32xf32, #tpu.memory_space<vmem>>, vector<2x32xf32>
    tpu.vector_store %arg9[%c12, %c0_52], %232 {strides = array<i32>} : memref<16x32xf32, #tpu.memory_space<vmem>>, vector<2x32xf32>,
    %234 = arith.truncf %232 : vector<2x32xf32> to vector<2x32xbf16>
    %cst_53 = arith.constant dense<0.000000e+00> : vector<2x96xf32>
    %235 = tpu.matmul %234, %15, %cst_53 {dimension_numbers = #tpu.dot_dimension_numbers<[1], [0], [0], [1], [0, 0, 1, 1], [], []>} : vector<2x32xbf16>, vector<32x96xbf16>, vector<2x96xf32> -> vector<2x96xf32>
    %236 = vector.extract_strided_slice %13 {offsets = [14, 0], sizes = [2, 96], strides = [1, 1]} : vector<16x96xf32> to vector<2x96xf32>
    %237 = vector.extract_strided_slice %236 {offsets = [0, 0], sizes = [2, 32], strides = [1, 1]} : vector<2x96xf32> to vector<2x32xf32>
    %238 = vector.extract_strided_slice %235 {offsets = [0, 0], sizes = [2, 32], strides = [1, 1]} : vector<2x96xf32> to vector<2x32xf32>
    %239 = arith.addf %237, %238 : vector<2x32xf32>
    %240 = arith.negf %239 : vector<2x32xf32>
    %241 = math.exp %240 : vector<2x32xf32>
    %cst_54 = arith.constant 1.000000e+00 : f32
    %242 = vector.broadcast %cst_54 : f32 to vector<2x32xf32>
    %243 = arith.addf %242, %241 : vector<2x32xf32>
    %244 = arith.divf %242, %243 : vector<2x32xf32>
    %245 = vector.extract_strided_slice %236 {offsets = [0, 32], sizes = [2, 32], strides = [1, 1]} : vector<2x96xf32> to vector<2x32xf32>
    %246 = vector.extract_strided_slice %235 {offsets = [0, 32], sizes = [2, 32], strides = [1, 1]} : vector<2x96xf32> to vector<2x32xf32>
    %247 = arith.addf %245, %246 : vector<2x32xf32>
    %248 = arith.negf %247 : vector<2x32xf32>
    %249 = math.exp %248 : vector<2x32xf32>
    %cst_55 = arith.constant 1.000000e+00 : f32
    %250 = vector.broadcast %cst_55 : f32 to vector<2x32xf32>
    %251 = arith.addf %250, %249 : vector<2x32xf32>
    %252 = arith.divf %250, %251 : vector<2x32xf32>
    %253 = vector.extract_strided_slice %236 {offsets = [0, 64], sizes = [2, 32], strides = [1, 1]} : vector<2x96xf32> to vector<2x32xf32>
    %254 = vector.extract_strided_slice %235 {offsets = [0, 64], sizes = [2, 32], strides = [1, 1]} : vector<2x96xf32> to vector<2x32xf32>
    %255 = arith.addf %254, %7 : vector<2x32xf32>
    %256 = arith.mulf %244, %255 : vector<2x32xf32>
    %257 = arith.addf %253, %256 : vector<2x32xf32>
    %258 = math.tanh %257 : vector<2x32xf32>
    %cst_56 = arith.constant 1.000000e+00 : f32
    %259 = vector.broadcast %cst_56 : f32 to vector<2x32xf32>
    %260 = arith.subf %259, %252 : vector<2x32xf32>
    %261 = arith.mulf %260, %258 : vector<2x32xf32>
    %262 = arith.mulf %252, %232 : vector<2x32xf32>
    %263 = arith.addf %261, %262 : vector<2x32xf32>
    %c14 = arith.constant 14 : index
    %c0_57 = arith.constant 0 : index
    %264 = vector.load %arg9[%c14, %c0_57] : memref<16x32xf32, #tpu.memory_space<vmem>>, vector<2x32xf32>
    tpu.vector_store %arg9[%c14, %c0_57], %263 {strides = array<i32>} : memref<16x32xf32, #tpu.memory_space<vmem>>, vector<2x32xf32>,
    %c1 = arith.constant 1 : index
    %c0_58 = arith.constant 0 : index
    %c0_59 = arith.constant 0 : index
    %265 = vector.load %arg4[%c1, %c0_58, %c0_59] : memref<2x1x96xf32, #tpu.memory_space<vmem>>, vector<1x1x96xf32>
    %266 = vector.shape_cast %265 : vector<1x1x96xf32> to vector<1x96xf32>
    %c1_60 = arith.constant 1 : index
    %c0_61 = arith.constant 0 : index
    %c0_62 = arith.constant 0 : index
    %267 = vector.load %arg5[%c1_60, %c0_61, %c0_62] : memref<2x1x32xf32, #tpu.memory_space<vmem>>, vector<1x1x32xf32>
    %268 = vector.shape_cast %267 : vector<1x1x32xf32> to vector<1x32xf32>
    %269 = vector.shape_cast %268 : vector<1x32xf32> to vector<1x32xf32>
    %270 = vector.broadcast %269 : vector<1x32xf32> to vector<2x32xf32>
    %c0_63 = arith.constant 0 : index
    %c0_64 = arith.constant 0 : index
    %271 = vector.load %arg9[%c0_63, %c0_64] : memref<16x32xf32, #tpu.memory_space<vmem>>, vector<16x32xf32>
    %c0_65 = arith.constant 0 : index
    %c0_66 = arith.constant 0 : index
    %c0_67 = arith.constant 0 : index
    %272 = vector.load %arg2[%c0_65, %c0_66, %c0_67] : memref<1x32x96xbf16, #tpu.memory_space<vmem>>, vector<1x32x96xbf16>
    %273 = vector.shape_cast %272 : vector<1x32x96xbf16> to vector<32x96xbf16>
    %274 = arith.truncf %271 : vector<16x32xf32> to vector<16x32xbf16>
    %cst_68 = arith.constant dense<0.000000e+00> : vector<16x96xf32>
    %275 = tpu.matmul %274, %273, %cst_68 {dimension_numbers = #tpu.dot_dimension_numbers<[1], [0], [0], [1], [0, 0, 1, 1], [], []>} : vector<16x32xbf16>, vector<32x96xbf16>, vector<16x96xf32> -> vector<16x96xf32>
    %276 = vector.broadcast %266 : vector<1x96xf32> to vector<16x96xf32>
    %277 = arith.addf %275, %276 : vector<16x96xf32>
    %c1_69 = arith.constant 1 : index
    %c0_70 = arith.constant 0 : index
    %c0_71 = arith.constant 0 : index
    %278 = vector.load %arg3[%c1_69, %c0_70, %c0_71] : memref<2x32x96xbf16, #tpu.memory_space<vmem>>, vector<1x32x96xbf16>
    %279 = vector.shape_cast %278 : vector<1x32x96xbf16> to vector<32x96xbf16>
    %cst_72 = arith.constant 0.000000e+00 : f32
    %280 = vector.broadcast %cst_72 : f32 to vector<2x32xf32>
    %281 = arith.truncf %280 : vector<2x32xf32> to vector<2x32xbf16>
    %cst_73 = arith.constant dense<0.000000e+00> : vector<2x96xf32>
    %282 = tpu.matmul %281, %279, %cst_73 {dimension_numbers = #tpu.dot_dimension_numbers<[1], [0], [0], [1], [0, 0, 1, 1], [], []>} : vector<2x32xbf16>, vector<32x96xbf16>, vector<2x96xf32> -> vector<2x96xf32>
    %283 = vector.extract_strided_slice %277 {offsets = [0, 0], sizes = [2, 96], strides = [1, 1]} : vector<16x96xf32> to vector<2x96xf32>
    %284 = vector.extract_strided_slice %283 {offsets = [0, 0], sizes = [2, 32], strides = [1, 1]} : vector<2x96xf32> to vector<2x32xf32>
    %285 = vector.extract_strided_slice %282 {offsets = [0, 0], sizes = [2, 32], strides = [1, 1]} : vector<2x96xf32> to vector<2x32xf32>
    %286 = arith.addf %284, %285 : vector<2x32xf32>
    %287 = arith.negf %286 : vector<2x32xf32>
    %288 = math.exp %287 : vector<2x32xf32>
    %cst_74 = arith.constant 1.000000e+00 : f32
    %289 = vector.broadcast %cst_74 : f32 to vector<2x32xf32>
    %290 = arith.addf %289, %288 : vector<2x32xf32>
    %291 = arith.divf %289, %290 : vector<2x32xf32>
    %292 = vector.extract_strided_slice %283 {offsets = [0, 32], sizes = [2, 32], strides = [1, 1]} : vector<2x96xf32> to vector<2x32xf32>
    %293 = vector.extract_strided_slice %282 {offsets = [0, 32], sizes = [2, 32], strides = [1, 1]} : vector<2x96xf32> to vector<2x32xf32>
    %294 = arith.addf %292, %293 : vector<2x32xf32>
    %295 = arith.negf %294 : vector<2x32xf32>
    %296 = math.exp %295 : vector<2x32xf32>
    %cst_75 = arith.constant 1.000000e+00 : f32
    %297 = vector.broadcast %cst_75 : f32 to vector<2x32xf32>
    %298 = arith.addf %297, %296 : vector<2x32xf32>
    %299 = arith.divf %297, %298 : vector<2x32xf32>
    %300 = vector.extract_strided_slice %283 {offsets = [0, 64], sizes = [2, 32], strides = [1, 1]} : vector<2x96xf32> to vector<2x32xf32>
    %301 = vector.extract_strided_slice %282 {offsets = [0, 64], sizes = [2, 32], strides = [1, 1]} : vector<2x96xf32> to vector<2x32xf32>
    %302 = arith.addf %301, %270 : vector<2x32xf32>
    %303 = arith.mulf %291, %302 : vector<2x32xf32>
    %304 = arith.addf %300, %303 : vector<2x32xf32>
    %305 = math.tanh %304 : vector<2x32xf32>
    %cst_76 = arith.constant 1.000000e+00 : f32
    %306 = vector.broadcast %cst_76 : f32 to vector<2x32xf32>
    %307 = arith.subf %306, %299 : vector<2x32xf32>
    %308 = arith.mulf %307, %305 : vector<2x32xf32>
    %309 = arith.mulf %299, %280 : vector<2x32xf32>
    %310 = arith.addf %308, %309 : vector<2x32xf32>
    %311 = vector.broadcast %0 : vector<1x32xf32> to vector<2x32xf32>
    %312 = arith.mulf %310, %311 : vector<2x32xf32>
    %cst_77 = arith.constant dense<0.000000e+00> : vector<2xf32>
    %313 = vector.multi_reduction <add>, %312, %cst_77 [1] : vector<2x32xf32> to vector<2xf32>
    %314 = vector.shape_cast %313 : vector<2xf32> to vector<2x1xf32>
    %315 = vector.broadcast %1 : vector<1x1xf32> to vector<2x1xf32>
    %316 = arith.addf %314, %315 : vector<2x1xf32>
    %317 = arith.truncf %310 : vector<2x32xf32> to vector<2x32xbf16>
    %cst_78 = arith.constant dense<0.000000e+00> : vector<2x96xf32>
    %318 = tpu.matmul %317, %279, %cst_78 {dimension_numbers = #tpu.dot_dimension_numbers<[1], [0], [0], [1], [0, 0, 1, 1], [], []>} : vector<2x32xbf16>, vector<32x96xbf16>, vector<2x96xf32> -> vector<2x96xf32>
    %319 = vector.extract_strided_slice %277 {offsets = [2, 0], sizes = [2, 96], strides = [1, 1]} : vector<16x96xf32> to vector<2x96xf32>
    %320 = vector.extract_strided_slice %319 {offsets = [0, 0], sizes = [2, 32], strides = [1, 1]} : vector<2x96xf32> to vector<2x32xf32>
    %321 = vector.extract_strided_slice %318 {offsets = [0, 0], sizes = [2, 32], strides = [1, 1]} : vector<2x96xf32> to vector<2x32xf32>
    %322 = arith.addf %320, %321 : vector<2x32xf32>
    %323 = arith.negf %322 : vector<2x32xf32>
    %324 = math.exp %323 : vector<2x32xf32>
    %cst_79 = arith.constant 1.000000e+00 : f32
    %325 = vector.broadcast %cst_79 : f32 to vector<2x32xf32>
    %326 = arith.addf %325, %324 : vector<2x32xf32>
    %327 = arith.divf %325, %326 : vector<2x32xf32>
    %328 = vector.extract_strided_slice %319 {offsets = [0, 32], sizes = [2, 32], strides = [1, 1]} : vector<2x96xf32> to vector<2x32xf32>
    %329 = vector.extract_strided_slice %318 {offsets = [0, 32], sizes = [2, 32], strides = [1, 1]} : vector<2x96xf32> to vector<2x32xf32>
    %330 = arith.addf %328, %329 : vector<2x32xf32>
    %331 = arith.negf %330 : vector<2x32xf32>
    %332 = math.exp %331 : vector<2x32xf32>
    %cst_80 = arith.constant 1.000000e+00 : f32
    %333 = vector.broadcast %cst_80 : f32 to vector<2x32xf32>
    %334 = arith.addf %333, %332 : vector<2x32xf32>
    %335 = arith.divf %333, %334 : vector<2x32xf32>
    %336 = vector.extract_strided_slice %319 {offsets = [0, 64], sizes = [2, 32], strides = [1, 1]} : vector<2x96xf32> to vector<2x32xf32>
    %337 = vector.extract_strided_slice %318 {offsets = [0, 64], sizes = [2, 32], strides = [1, 1]} : vector<2x96xf32> to vector<2x32xf32>
    %338 = arith.addf %337, %270 : vector<2x32xf32>
    %339 = arith.mulf %327, %338 : vector<2x32xf32>
    %340 = arith.addf %336, %339 : vector<2x32xf32>
    %341 = math.tanh %340 : vector<2x32xf32>
    %cst_81 = arith.constant 1.000000e+00 : f32
    %342 = vector.broadcast %cst_81 : f32 to vector<2x32xf32>
    %343 = arith.subf %342, %335 : vector<2x32xf32>
    %344 = arith.mulf %343, %341 : vector<2x32xf32>
    %345 = arith.mulf %335, %310 : vector<2x32xf32>
    %346 = arith.addf %344, %345 : vector<2x32xf32>
    %347 = vector.broadcast %0 : vector<1x32xf32> to vector<2x32xf32>
    %348 = arith.mulf %346, %347 : vector<2x32xf32>
    %cst_82 = arith.constant dense<0.000000e+00> : vector<2xf32>
    %349 = vector.multi_reduction <add>, %348, %cst_82 [1] : vector<2x32xf32> to vector<2xf32>
    %350 = vector.shape_cast %349 : vector<2xf32> to vector<2x1xf32>
    %351 = vector.broadcast %1 : vector<1x1xf32> to vector<2x1xf32>
    %352 = arith.addf %350, %351 : vector<2x1xf32>
    %353 = arith.truncf %346 : vector<2x32xf32> to vector<2x32xbf16>
    %cst_83 = arith.constant dense<0.000000e+00> : vector<2x96xf32>
    %354 = tpu.matmul %353, %279, %cst_83 {dimension_numbers = #tpu.dot_dimension_numbers<[1], [0], [0], [1], [0, 0, 1, 1], [], []>} : vector<2x32xbf16>, vector<32x96xbf16>, vector<2x96xf32> -> vector<2x96xf32>
    %355 = vector.extract_strided_slice %277 {offsets = [4, 0], sizes = [2, 96], strides = [1, 1]} : vector<16x96xf32> to vector<2x96xf32>
    %356 = vector.extract_strided_slice %355 {offsets = [0, 0], sizes = [2, 32], strides = [1, 1]} : vector<2x96xf32> to vector<2x32xf32>
    %357 = vector.extract_strided_slice %354 {offsets = [0, 0], sizes = [2, 32], strides = [1, 1]} : vector<2x96xf32> to vector<2x32xf32>
    %358 = arith.addf %356, %357 : vector<2x32xf32>
    %359 = arith.negf %358 : vector<2x32xf32>
    %360 = math.exp %359 : vector<2x32xf32>
    %cst_84 = arith.constant 1.000000e+00 : f32
    %361 = vector.broadcast %cst_84 : f32 to vector<2x32xf32>
    %362 = arith.addf %361, %360 : vector<2x32xf32>
    %363 = arith.divf %361, %362 : vector<2x32xf32>
    %364 = vector.extract_strided_slice %355 {offsets = [0, 32], sizes = [2, 32], strides = [1, 1]} : vector<2x96xf32> to vector<2x32xf32>
    %365 = vector.extract_strided_slice %354 {offsets = [0, 32], sizes = [2, 32], strides = [1, 1]} : vector<2x96xf32> to vector<2x32xf32>
    %366 = arith.addf %364, %365 : vector<2x32xf32>
    %367 = arith.negf %366 : vector<2x32xf32>
    %368 = math.exp %367 : vector<2x32xf32>
    %cst_85 = arith.constant 1.000000e+00 : f32
    %369 = vector.broadcast %cst_85 : f32 to vector<2x32xf32>
    %370 = arith.addf %369, %368 : vector<2x32xf32>
    %371 = arith.divf %369, %370 : vector<2x32xf32>
    %372 = vector.extract_strided_slice %355 {offsets = [0, 64], sizes = [2, 32], strides = [1, 1]} : vector<2x96xf32> to vector<2x32xf32>
    %373 = vector.extract_strided_slice %354 {offsets = [0, 64], sizes = [2, 32], strides = [1, 1]} : vector<2x96xf32> to vector<2x32xf32>
    %374 = arith.addf %373, %270 : vector<2x32xf32>
    %375 = arith.mulf %363, %374 : vector<2x32xf32>
    %376 = arith.addf %372, %375 : vector<2x32xf32>
    %377 = math.tanh %376 : vector<2x32xf32>
    %cst_86 = arith.constant 1.000000e+00 : f32
    %378 = vector.broadcast %cst_86 : f32 to vector<2x32xf32>
    %379 = arith.subf %378, %371 : vector<2x32xf32>
    %380 = arith.mulf %379, %377 : vector<2x32xf32>
    %381 = arith.mulf %371, %346 : vector<2x32xf32>
    %382 = arith.addf %380, %381 : vector<2x32xf32>
    %383 = vector.broadcast %0 : vector<1x32xf32> to vector<2x32xf32>
    %384 = arith.mulf %382, %383 : vector<2x32xf32>
    %cst_87 = arith.constant dense<0.000000e+00> : vector<2xf32>
    %385 = vector.multi_reduction <add>, %384, %cst_87 [1] : vector<2x32xf32> to vector<2xf32>
    %386 = vector.shape_cast %385 : vector<2xf32> to vector<2x1xf32>
    %387 = vector.broadcast %1 : vector<1x1xf32> to vector<2x1xf32>
    %388 = arith.addf %386, %387 : vector<2x1xf32>
    %389 = arith.truncf %382 : vector<2x32xf32> to vector<2x32xbf16>
    %cst_88 = arith.constant dense<0.000000e+00> : vector<2x96xf32>
    %390 = tpu.matmul %389, %279, %cst_88 {dimension_numbers = #tpu.dot_dimension_numbers<[1], [0], [0], [1], [0, 0, 1, 1], [], []>} : vector<2x32xbf16>, vector<32x96xbf16>, vector<2x96xf32> -> vector<2x96xf32>
    %391 = vector.extract_strided_slice %277 {offsets = [6, 0], sizes = [2, 96], strides = [1, 1]} : vector<16x96xf32> to vector<2x96xf32>
    %392 = vector.extract_strided_slice %391 {offsets = [0, 0], sizes = [2, 32], strides = [1, 1]} : vector<2x96xf32> to vector<2x32xf32>
    %393 = vector.extract_strided_slice %390 {offsets = [0, 0], sizes = [2, 32], strides = [1, 1]} : vector<2x96xf32> to vector<2x32xf32>
    %394 = arith.addf %392, %393 : vector<2x32xf32>
    %395 = arith.negf %394 : vector<2x32xf32>
    %396 = math.exp %395 : vector<2x32xf32>
    %cst_89 = arith.constant 1.000000e+00 : f32
    %397 = vector.broadcast %cst_89 : f32 to vector<2x32xf32>
    %398 = arith.addf %397, %396 : vector<2x32xf32>
    %399 = arith.divf %397, %398 : vector<2x32xf32>
    %400 = vector.extract_strided_slice %391 {offsets = [0, 32], sizes = [2, 32], strides = [1, 1]} : vector<2x96xf32> to vector<2x32xf32>
    %401 = vector.extract_strided_slice %390 {offsets = [0, 32], sizes = [2, 32], strides = [1, 1]} : vector<2x96xf32> to vector<2x32xf32>
    %402 = arith.addf %400, %401 : vector<2x32xf32>
    %403 = arith.negf %402 : vector<2x32xf32>
    %404 = math.exp %403 : vector<2x32xf32>
    %cst_90 = arith.constant 1.000000e+00 : f32
    %405 = vector.broadcast %cst_90 : f32 to vector<2x32xf32>
    %406 = arith.addf %405, %404 : vector<2x32xf32>
    %407 = arith.divf %405, %406 : vector<2x32xf32>
    %408 = vector.extract_strided_slice %391 {offsets = [0, 64], sizes = [2, 32], strides = [1, 1]} : vector<2x96xf32> to vector<2x32xf32>
    %409 = vector.extract_strided_slice %390 {offsets = [0, 64], sizes = [2, 32], strides = [1, 1]} : vector<2x96xf32> to vector<2x32xf32>
    %410 = arith.addf %409, %270 : vector<2x32xf32>
    %411 = arith.mulf %399, %410 : vector<2x32xf32>
    %412 = arith.addf %408, %411 : vector<2x32xf32>
    %413 = math.tanh %412 : vector<2x32xf32>
    %cst_91 = arith.constant 1.000000e+00 : f32
    %414 = vector.broadcast %cst_91 : f32 to vector<2x32xf32>
    %415 = arith.subf %414, %407 : vector<2x32xf32>
    %416 = arith.mulf %415, %413 : vector<2x32xf32>
    %417 = arith.mulf %407, %382 : vector<2x32xf32>
    %418 = arith.addf %416, %417 : vector<2x32xf32>
    %419 = vector.broadcast %0 : vector<1x32xf32> to vector<2x32xf32>
    %420 = arith.mulf %418, %419 : vector<2x32xf32>
    %cst_92 = arith.constant dense<0.000000e+00> : vector<2xf32>
    %421 = vector.multi_reduction <add>, %420, %cst_92 [1] : vector<2x32xf32> to vector<2xf32>
    %422 = vector.shape_cast %421 : vector<2xf32> to vector<2x1xf32>
    %423 = vector.broadcast %1 : vector<1x1xf32> to vector<2x1xf32>
    %424 = arith.addf %422, %423 : vector<2x1xf32>
    %425 = arith.truncf %418 : vector<2x32xf32> to vector<2x32xbf16>
    %cst_93 = arith.constant dense<0.000000e+00> : vector<2x96xf32>
    %426 = tpu.matmul %425, %279, %cst_93 {dimension_numbers = #tpu.dot_dimension_numbers<[1], [0], [0], [1], [0, 0, 1, 1], [], []>} : vector<2x32xbf16>, vector<32x96xbf16>, vector<2x96xf32> -> vector<2x96xf32>
    %427 = vector.extract_strided_slice %277 {offsets = [8, 0], sizes = [2, 96], strides = [1, 1]} : vector<16x96xf32> to vector<2x96xf32>
    %428 = vector.extract_strided_slice %427 {offsets = [0, 0], sizes = [2, 32], strides = [1, 1]} : vector<2x96xf32> to vector<2x32xf32>
    %429 = vector.extract_strided_slice %426 {offsets = [0, 0], sizes = [2, 32], strides = [1, 1]} : vector<2x96xf32> to vector<2x32xf32>
    %430 = arith.addf %428, %429 : vector<2x32xf32>
    %431 = arith.negf %430 : vector<2x32xf32>
    %432 = math.exp %431 : vector<2x32xf32>
    %cst_94 = arith.constant 1.000000e+00 : f32
    %433 = vector.broadcast %cst_94 : f32 to vector<2x32xf32>
    %434 = arith.addf %433, %432 : vector<2x32xf32>
    %435 = arith.divf %433, %434 : vector<2x32xf32>
    %436 = vector.extract_strided_slice %427 {offsets = [0, 32], sizes = [2, 32], strides = [1, 1]} : vector<2x96xf32> to vector<2x32xf32>
    %437 = vector.extract_strided_slice %426 {offsets = [0, 32], sizes = [2, 32], strides = [1, 1]} : vector<2x96xf32> to vector<2x32xf32>
    %438 = arith.addf %436, %437 : vector<2x32xf32>
    %439 = arith.negf %438 : vector<2x32xf32>
    %440 = math.exp %439 : vector<2x32xf32>
    %cst_95 = arith.constant 1.000000e+00 : f32
    %441 = vector.broadcast %cst_95 : f32 to vector<2x32xf32>
    %442 = arith.addf %441, %440 : vector<2x32xf32>
    %443 = arith.divf %441, %442 : vector<2x32xf32>
    %444 = vector.extract_strided_slice %427 {offsets = [0, 64], sizes = [2, 32], strides = [1, 1]} : vector<2x96xf32> to vector<2x32xf32>
    %445 = vector.extract_strided_slice %426 {offsets = [0, 64], sizes = [2, 32], strides = [1, 1]} : vector<2x96xf32> to vector<2x32xf32>
    %446 = arith.addf %445, %270 : vector<2x32xf32>
    %447 = arith.mulf %435, %446 : vector<2x32xf32>
    %448 = arith.addf %444, %447 : vector<2x32xf32>
    %449 = math.tanh %448 : vector<2x32xf32>
    %cst_96 = arith.constant 1.000000e+00 : f32
    %450 = vector.broadcast %cst_96 : f32 to vector<2x32xf32>
    %451 = arith.subf %450, %443 : vector<2x32xf32>
    %452 = arith.mulf %451, %449 : vector<2x32xf32>
    %453 = arith.mulf %443, %418 : vector<2x32xf32>
    %454 = arith.addf %452, %453 : vector<2x32xf32>
    %455 = vector.broadcast %0 : vector<1x32xf32> to vector<2x32xf32>
    %456 = arith.mulf %454, %455 : vector<2x32xf32>
    %cst_97 = arith.constant dense<0.000000e+00> : vector<2xf32>
    %457 = vector.multi_reduction <add>, %456, %cst_97 [1] : vector<2x32xf32> to vector<2xf32>
    %458 = vector.shape_cast %457 : vector<2xf32> to vector<2x1xf32>
    %459 = vector.broadcast %1 : vector<1x1xf32> to vector<2x1xf32>
    %460 = arith.addf %458, %459 : vector<2x1xf32>
    %461 = arith.truncf %454 : vector<2x32xf32> to vector<2x32xbf16>
    %cst_98 = arith.constant dense<0.000000e+00> : vector<2x96xf32>
    %462 = tpu.matmul %461, %279, %cst_98 {dimension_numbers = #tpu.dot_dimension_numbers<[1], [0], [0], [1], [0, 0, 1, 1], [], []>} : vector<2x32xbf16>, vector<32x96xbf16>, vector<2x96xf32> -> vector<2x96xf32>
    %463 = vector.extract_strided_slice %277 {offsets = [10, 0], sizes = [2, 96], strides = [1, 1]} : vector<16x96xf32> to vector<2x96xf32>
    %464 = vector.extract_strided_slice %463 {offsets = [0, 0], sizes = [2, 32], strides = [1, 1]} : vector<2x96xf32> to vector<2x32xf32>
    %465 = vector.extract_strided_slice %462 {offsets = [0, 0], sizes = [2, 32], strides = [1, 1]} : vector<2x96xf32> to vector<2x32xf32>
    %466 = arith.addf %464, %465 : vector<2x32xf32>
    %467 = arith.negf %466 : vector<2x32xf32>
    %468 = math.exp %467 : vector<2x32xf32>
    %cst_99 = arith.constant 1.000000e+00 : f32
    %469 = vector.broadcast %cst_99 : f32 to vector<2x32xf32>
    %470 = arith.addf %469, %468 : vector<2x32xf32>
    %471 = arith.divf %469, %470 : vector<2x32xf32>
    %472 = vector.extract_strided_slice %463 {offsets = [0, 32], sizes = [2, 32], strides = [1, 1]} : vector<2x96xf32> to vector<2x32xf32>
    %473 = vector.extract_strided_slice %462 {offsets = [0, 32], sizes = [2, 32], strides = [1, 1]} : vector<2x96xf32> to vector<2x32xf32>
    %474 = arith.addf %472, %473 : vector<2x32xf32>
    %475 = arith.negf %474 : vector<2x32xf32>
    %476 = math.exp %475 : vector<2x32xf32>
    %cst_100 = arith.constant 1.000000e+00 : f32
    %477 = vector.broadcast %cst_100 : f32 to vector<2x32xf32>
    %478 = arith.addf %477, %476 : vector<2x32xf32>
    %479 = arith.divf %477, %478 : vector<2x32xf32>
    %480 = vector.extract_strided_slice %463 {offsets = [0, 64], sizes = [2, 32], strides = [1, 1]} : vector<2x96xf32> to vector<2x32xf32>
    %481 = vector.extract_strided_slice %462 {offsets = [0, 64], sizes = [2, 32], strides = [1, 1]} : vector<2x96xf32> to vector<2x32xf32>
    %482 = arith.addf %481, %270 : vector<2x32xf32>
    %483 = arith.mulf %471, %482 : vector<2x32xf32>
    %484 = arith.addf %480, %483 : vector<2x32xf32>
    %485 = math.tanh %484 : vector<2x32xf32>
    %cst_101 = arith.constant 1.000000e+00 : f32
    %486 = vector.broadcast %cst_101 : f32 to vector<2x32xf32>
    %487 = arith.subf %486, %479 : vector<2x32xf32>
    %488 = arith.mulf %487, %485 : vector<2x32xf32>
    %489 = arith.mulf %479, %454 : vector<2x32xf32>
    %490 = arith.addf %488, %489 : vector<2x32xf32>
    %491 = vector.broadcast %0 : vector<1x32xf32> to vector<2x32xf32>
    %492 = arith.mulf %490, %491 : vector<2x32xf32>
    %cst_102 = arith.constant dense<0.000000e+00> : vector<2xf32>
    %493 = vector.multi_reduction <add>, %492, %cst_102 [1] : vector<2x32xf32> to vector<2xf32>
    %494 = vector.shape_cast %493 : vector<2xf32> to vector<2x1xf32>
    %495 = vector.broadcast %1 : vector<1x1xf32> to vector<2x1xf32>
    %496 = arith.addf %494, %495 : vector<2x1xf32>
    %497 = arith.truncf %490 : vector<2x32xf32> to vector<2x32xbf16>
    %cst_103 = arith.constant dense<0.000000e+00> : vector<2x96xf32>
    %498 = tpu.matmul %497, %279, %cst_103 {dimension_numbers = #tpu.dot_dimension_numbers<[1], [0], [0], [1], [0, 0, 1, 1], [], []>} : vector<2x32xbf16>, vector<32x96xbf16>, vector<2x96xf32> -> vector<2x96xf32>
    %499 = vector.extract_strided_slice %277 {offsets = [12, 0], sizes = [2, 96], strides = [1, 1]} : vector<16x96xf32> to vector<2x96xf32>
    %500 = vector.extract_strided_slice %499 {offsets = [0, 0], sizes = [2, 32], strides = [1, 1]} : vector<2x96xf32> to vector<2x32xf32>
    %501 = vector.extract_strided_slice %498 {offsets = [0, 0], sizes = [2, 32], strides = [1, 1]} : vector<2x96xf32> to vector<2x32xf32>
    %502 = arith.addf %500, %501 : vector<2x32xf32>
    %503 = arith.negf %502 : vector<2x32xf32>
    %504 = math.exp %503 : vector<2x32xf32>
    %cst_104 = arith.constant 1.000000e+00 : f32
    %505 = vector.broadcast %cst_104 : f32 to vector<2x32xf32>
    %506 = arith.addf %505, %504 : vector<2x32xf32>
    %507 = arith.divf %505, %506 : vector<2x32xf32>
    %508 = vector.extract_strided_slice %499 {offsets = [0, 32], sizes = [2, 32], strides = [1, 1]} : vector<2x96xf32> to vector<2x32xf32>
    %509 = vector.extract_strided_slice %498 {offsets = [0, 32], sizes = [2, 32], strides = [1, 1]} : vector<2x96xf32> to vector<2x32xf32>
    %510 = arith.addf %508, %509 : vector<2x32xf32>
    %511 = arith.negf %510 : vector<2x32xf32>
    %512 = math.exp %511 : vector<2x32xf32>
    %cst_105 = arith.constant 1.000000e+00 : f32
    %513 = vector.broadcast %cst_105 : f32 to vector<2x32xf32>
    %514 = arith.addf %513, %512 : vector<2x32xf32>
    %515 = arith.divf %513, %514 : vector<2x32xf32>
    %516 = vector.extract_strided_slice %499 {offsets = [0, 64], sizes = [2, 32], strides = [1, 1]} : vector<2x96xf32> to vector<2x32xf32>
    %517 = vector.extract_strided_slice %498 {offsets = [0, 64], sizes = [2, 32], strides = [1, 1]} : vector<2x96xf32> to vector<2x32xf32>
    %518 = arith.addf %517, %270 : vector<2x32xf32>
    %519 = arith.mulf %507, %518 : vector<2x32xf32>
    %520 = arith.addf %516, %519 : vector<2x32xf32>
    %521 = math.tanh %520 : vector<2x32xf32>
    %cst_106 = arith.constant 1.000000e+00 : f32
    %522 = vector.broadcast %cst_106 : f32 to vector<2x32xf32>
    %523 = arith.subf %522, %515 : vector<2x32xf32>
    %524 = arith.mulf %523, %521 : vector<2x32xf32>
    %525 = arith.mulf %515, %490 : vector<2x32xf32>
    %526 = arith.addf %524, %525 : vector<2x32xf32>
    %527 = vector.broadcast %0 : vector<1x32xf32> to vector<2x32xf32>
    %528 = arith.mulf %526, %527 : vector<2x32xf32>
    %cst_107 = arith.constant dense<0.000000e+00> : vector<2xf32>
    %529 = vector.multi_reduction <add>, %528, %cst_107 [1] : vector<2x32xf32> to vector<2xf32>
    %530 = vector.shape_cast %529 : vector<2xf32> to vector<2x1xf32>
    %531 = vector.broadcast %1 : vector<1x1xf32> to vector<2x1xf32>
    %532 = arith.addf %530, %531 : vector<2x1xf32>
    %533 = arith.truncf %526 : vector<2x32xf32> to vector<2x32xbf16>
    %cst_108 = arith.constant dense<0.000000e+00> : vector<2x96xf32>
    %534 = tpu.matmul %533, %279, %cst_108 {dimension_numbers = #tpu.dot_dimension_numbers<[1], [0], [0], [1], [0, 0, 1, 1], [], []>} : vector<2x32xbf16>, vector<32x96xbf16>, vector<2x96xf32> -> vector<2x96xf32>
    %535 = vector.extract_strided_slice %277 {offsets = [14, 0], sizes = [2, 96], strides = [1, 1]} : vector<16x96xf32> to vector<2x96xf32>
    %536 = vector.extract_strided_slice %535 {offsets = [0, 0], sizes = [2, 32], strides = [1, 1]} : vector<2x96xf32> to vector<2x32xf32>
    %537 = vector.extract_strided_slice %534 {offsets = [0, 0], sizes = [2, 32], strides = [1, 1]} : vector<2x96xf32> to vector<2x32xf32>
    %538 = arith.addf %536, %537 : vector<2x32xf32>
    %539 = arith.negf %538 : vector<2x32xf32>
    %540 = math.exp %539 : vector<2x32xf32>
    %cst_109 = arith.constant 1.000000e+00 : f32
    %541 = vector.broadcast %cst_109 : f32 to vector<2x32xf32>
    %542 = arith.addf %541, %540 : vector<2x32xf32>
    %543 = arith.divf %541, %542 : vector<2x32xf32>
    %544 = vector.extract_strided_slice %535 {offsets = [0, 32], sizes = [2, 32], strides = [1, 1]} : vector<2x96xf32> to vector<2x32xf32>
    %545 = vector.extract_strided_slice %534 {offsets = [0, 32], sizes = [2, 32], strides = [1, 1]} : vector<2x96xf32> to vector<2x32xf32>
    %546 = arith.addf %544, %545 : vector<2x32xf32>
    %547 = arith.negf %546 : vector<2x32xf32>
    %548 = math.exp %547 : vector<2x32xf32>
    %cst_110 = arith.constant 1.000000e+00 : f32
    %549 = vector.broadcast %cst_110 : f32 to vector<2x32xf32>
    %550 = arith.addf %549, %548 : vector<2x32xf32>
    %551 = arith.divf %549, %550 : vector<2x32xf32>
    %552 = vector.extract_strided_slice %535 {offsets = [0, 64], sizes = [2, 32], strides = [1, 1]} : vector<2x96xf32> to vector<2x32xf32>
    %553 = vector.extract_strided_slice %534 {offsets = [0, 64], sizes = [2, 32], strides = [1, 1]} : vector<2x96xf32> to vector<2x32xf32>
    %554 = arith.addf %553, %270 : vector<2x32xf32>
    %555 = arith.mulf %543, %554 : vector<2x32xf32>
    %556 = arith.addf %552, %555 : vector<2x32xf32>
    %557 = math.tanh %556 : vector<2x32xf32>
    %cst_111 = arith.constant 1.000000e+00 : f32
    %558 = vector.broadcast %cst_111 : f32 to vector<2x32xf32>
    %559 = arith.subf %558, %551 : vector<2x32xf32>
    %560 = arith.mulf %559, %557 : vector<2x32xf32>
    %561 = arith.mulf %551, %526 : vector<2x32xf32>
    %562 = arith.addf %560, %561 : vector<2x32xf32>
    %563 = vector.broadcast %0 : vector<1x32xf32> to vector<2x32xf32>
    %564 = arith.mulf %562, %563 : vector<2x32xf32>
    %cst_112 = arith.constant dense<0.000000e+00> : vector<2xf32>
    %565 = vector.multi_reduction <add>, %564, %cst_112 [1] : vector<2x32xf32> to vector<2xf32>
    %566 = vector.shape_cast %565 : vector<2xf32> to vector<2x1xf32>
    %567 = vector.broadcast %1 : vector<1x1xf32> to vector<2x1xf32>
    %568 = arith.addf %566, %567 : vector<2x1xf32>
    %569 = tpu.concatenate %316, %352, %388, %424, %460, %496, %532, %568 in 1 : vector<2x1xf32>, vector<2x1xf32>, vector<2x1xf32>, vector<2x1xf32>, vector<2x1xf32>, vector<2x1xf32>, vector<2x1xf32>, vector<2x1xf32> -> vector<2x8xf32>
    %570 = arith.negf %569 : vector<2x8xf32>
    %571 = math.exp %570 : vector<2x8xf32>
    %cst_113 = arith.constant 1.000000e+00 : f32
    %572 = vector.broadcast %cst_113 : f32 to vector<2x8xf32>
    %573 = arith.addf %572, %571 : vector<2x8xf32>
    %574 = arith.divf %572, %573 : vector<2x8xf32>
    %c0_114 = arith.constant 0 : index
    %c0_115 = arith.constant 0 : index
    %575 = vector.load %arg8[%c0_114, %c0_115] : memref<2x8xf32, #tpu.memory_space<vmem>>, vector<2x8xf32>
    tpu.vector_store %arg8[%c0_114, %c0_115], %574 {strides = array<i32>} : memref<2x8xf32, #tpu.memory_space<vmem>>, vector<2x8xf32>,
    return
  }
}

</mosaic_0001>

<bundles_post_ra>
// kernel: tpu_custom_call.1
= control target key start
LH: loop header
LB: loop body
LE: loop exit
PB: predicated region body
PF: predicated region fallthrough
CT: control target
= control target key end

     0   :  { %s2610_s0 = inlined_call_operand.vmem [shape: f32[16,8], index: 0, kind: input, shape index: {}]   ;;  %s2611_s1 = inlined_call_operand.vmem [shape: bf16[8,96], index: 1, kind: input, shape index: {}]   ;;  %s2612_s2 = inlined_call_operand.hbm [shape: bf16[1,32,96], index: 2, kind: input, shape index: {}]   ;;  %s2613_s3 = inlined_call_operand.vmem [shape: bf16[2,32,96], index: 3, kind: input, shape index: {}]   ;;  %s2614_s4 = inlined_call_operand.vmem [shape: f32[2,1,96], index: 4, kind: input, shape index: {}]   ;;  %s2615_s5 = inlined_call_operand.vmem [shape: f32[2,1,32], index: 5, kind: input, shape index: {}]   ;;  %s2616_s6 = inlined_call_operand.vmem [shape: f32[1,32], index: 6, kind: input, shape index: {}]   ;;  %s2617_s7 = inlined_call_operand.<no memory space> [shape: f32[1,1], index: 7, kind: input, shape index: {}]   ;;  %s2618_s8 = inlined_call_operand.hbm [shape: f32[2,8], index: 8, kind: output, shape index: {}]  }
   0x1   :  { %v13_v0 = vstv %s2617_s7 }
   0x2   :  { %14 = vst [vmem:[#allocation3] sm:$0x1] %v13_v0 }
   0x3   :  { %15 = vsyncpa [#allocation5], 0 }
   0x4   :  { %16 = vsyncpa [#allocation6], 0  ;;  %s2115_s29 = smov [#allocation4]   ;;  %s2067_s11 = scalar_lea.hbm %s2612_s2, 256 }
   0x5   :  { %s26_s30 = sshll.u32 %s2115_s29, 4  ;;  %p2068_p0 = scmp.ne.s32.totalorder %s2612_s2, %s2067_s11  ;;  %s27_s30 = int_to_ptr.vmem [resolvable:$true] %s26_s30 }
   0x6   :  { %p2071_p1 = scmp.lt.u32.totalorder %s2067_s11, %s2612_s2 }
   0x8   :  { %p2073_p2 = pnand %p2071_p1, %p2068_p0 }
   0xa   :  { %2076 = shalt.err (!%p2073_p2)
}
   0xb   :  { %s2077_s7 = scalar_lea.vmem %s27_s30, 256  ;;  %p2082_p4 = scmp.lt.s32.totalorder %s27_s30, %s27_s30 }
   0xc   :  { %p2078_p3 = scmp.ne.s32.totalorder %s27_s30, %s2077_s7  ;;  %p2083_p5 = scmp.lt.s32.totalorder %s2077_s7, %s2077_s7 }
   0xe   :  { %p2084_p6 = por %p2083_p5, %p2082_p4 }
  0x10   :  { %p2085_p7 = pnand %p2084_p6, %p2078_p3 }
  0x12   :  { %2088 = shalt.err (!%p2085_p7)
}
  0x13   :  { %s2116_s16 = smov 64   ;;  %s2117_s17 = smov 4  }
  0x14   :  { %32 = dma.hbm_to_vmem [thread:$0]  %s2612_s2, 256, %s27_s30, [#allocation5], %s2116_s16, %s2116_s16, %s2117_s17  }
  0x15   :  { %2111 = dma.done.wait [#allocation5], 256  }
  0x16   :  { %2112 = vsyncadd [#allocation5], 4294967040  ;;  %v2118_v1 = vmov 0.0   ;;  %vm2119_vm0 = vmmov 0   ;;  %vm70_vm1 = vcmask 1043456   ;;  %v2202_v2 = vld [vmem:[%s2613_s3] sm:$0xff]  }
  0x17   :  { %1810 = vmatprep.subr.bf16.mxu1 %v2118_v1  ;;  %1804 = vmatprep.subr.bf16.mxu0 %v2118_v1  ;;  %v58_v3 = vld [vmem:[%s2611_s1] sm:$0xf]  ;;  %v2211_v5 = vld [vmem:[%s2613_s3 + $0x8] sm:$0xff]   ;;  %vm66_vm2 = vcmask 64512   ;;  %v2120_v10 = vmov 0   ;;  %s2121_s9 = smov 96  }
  0x18   :  { %1806 = vmatprep.mubr.msk.bf16.mxu0 %vm2119_vm0, %v2118_v1  ;;  %1814 = vmatprep.mubr.msk.bf16.mxu1 %vm2119_vm0, %v2118_v1  ;;  %v72_v4 = vsel %vm70_vm1, %v58_v3, 0  ;;  %v56_v6 = vld [vmem:[%s2610_s0] sm:$0xff]  ;;  %v57_v7 = vld [vmem:[%s2610_s0 + $0x8] sm:$0xff]  ;;  %vm131_vm3 = vcmask 261120   ;;  %vm209_vm4 = vcmask 254976   ;;  %vm382_vm5 = vcmask 259076  }
  0x19   :  { %1811 = vmatpush3.bf16.msra.mxu1 %v2202_v2  ;;  %1805 = vmatpush3.bf16.msra.mxu0 %v72_v4  ;;  %v59_v8 = vpack.c.bf16 %v57_v7, %v56_v6  ;;  %v1700_v9 = vld [vmem:[%s2615_s5] ss:$0 sm:$0xff]  ;;  %vm295_vm6 = vcmask 257026   ;;  %vm469_vm7 = vcmask 261126   ;;  %s2122_s18 = smov 32   ;;  %s2125_s19 = smov 1  }
  0x1a   :  { %1812 = vmatprep.subr.bf16.mxu1 %v2118_v1  ;;  %182 = vrot.lane.b32.xlu0 %v1700_v9, %s2116_s16  ;;  %v1701_v14 = vld [vmem:[%s2614_s4] ss:$0 sm:$0xff]  ;;  %s2126_s20 = smov 3   ;;  %s2127_s21 = smov 6   ;;  %vm1663_vm8 = vcmask 7168   ;;  %vm1665_vm9 = vcmask 15360  }
  0x1b   :  { %1818 = vmatprep.subr.bf16.mxu0 %v2118_v1  ;;  %s2128_s2 = smov 7   ;;  %vm1667_vm10 = vcmask 23552   ;;  %vm1669_vm11 = vcmask 31744   ;;  %vm1671_vm12 = vcmask 39936   ;;  %vm1673_vm13 = vcmask 48128  }
  0x1c   :  { %1807 = vmatmul.mubr.msk.bf16.vlgmr.msra.gmra.mrb[0].mxu0 %vm66_vm2, %v59_v8  ;;  %vm1675_vm14 = vcmask 56320   ;;  %vm1683_vm15 = vcmask 58368  }
  0x1d   :  { %1813 = vmatpush3.bf16.msra.mxu1 %v2211_v5  ;;  %1819 = vmatpush3.bf16.msra.mxu0 %v2202_v2 }
  0x1e   :  { %1822 = vmatprep.mubr.msk.bf16.mxu0 %vm2119_vm0, %v2118_v1  ;;  %1820 = vmatprep.subr.bf16.mxu0 %v2118_v1 }
  0x1f   :  { %1826 = vmatprep.subr.bf16.mxu1 %v2118_v1 }
  0x20   :  { %1815 = vmatmul.mubr.bf16.vlgmr.msra.gmra.mrb[0].mxu1 %v2120_v10 }
  0x21   :  { %1827 = vmatpush3.bf16.msra.mxu1 %v2202_v2  ;;  %1830 = vmatprep.mubr.msk.bf16.mxu1 %vm2119_vm0, %v2118_v1 }
  0x22   :  { %1821 = vmatpush3.bf16.msra.mxu0 %v2211_v5  ;;  %1828 = vmatprep.subr.bf16.mxu1 %v2118_v1 }
  0x23   :  { %1834 = vmatprep.subr.bf16.mxu0 %v2118_v1 }
  0x25   :  { %1829 = vmatpush3.bf16.msra.mxu1 %v2211_v5 }
  0x26   :  { %1842 = vmatprep.subr.bf16.mxu1 %v2118_v1 }
  0x8c   :  { %v2240_v12 = vpop.permute.xlu0 %182 }
  0xef   :  { %v108_v11 = vpop.f32.mrb[0].mxu0 }
  0xf0   :  { %v1808_v13 = vpop.f32.mrb[1].mxu0  ;;  %v2249_v23 = vadd.f32 %v1701_v14, %v108_v11 }
  0xf1   :  { %v111_v15 = vpop.f32.mrb[2].mxu0 }
  0xf2   :  { %v2245_v17 = vadd.f32 %v1701_v14, %v111_v15  ;;  %v1809_v18 = vpop.f32.mrb[3].mxu0 }
  0xf3   :  { %v169_v16 = vpop.f32.mrb[0].mxu1 }
  0xf4   :  { %v1816_v19 = vpop.f32.mrb[1].mxu1  ;;  %v185_v20 = vadd.f32 %v2240_v12, %v169_v16  ;;  %v175_v24 = vadd.f32 %v169_v16, %v2249_v23 }
  0xf5   :  { %v172_v21 = vpop.f32.mrb[2].mxu1 }
  0xf6   :  { %v1817_v22 = vpop.f32.mrb[3].mxu1  ;;  %187 = vrot.lane.b32.xlu0 %v185_v20, %s2116_s16  ;;  %v1705_v25 = vmul.f32 -1.442695, %v175_v24 }
  0xf8   :  { %1967 = vpow2.f32 %v1705_v25 }
 0x102   :  { %v1968_v26 = vpop.eup %1967 }
 0x103   :  { %v179_v27 = vadd.f32 1.0, %v1968_v26 }
 0x105   :  { %1969 = vrcp.f32 %v179_v27 }
 0x10f   :  { %v1970_v28 = vpop.eup %1969 }
 0x110   :  { %v197_v34 = vsub.f32 1.0, %v1970_v28  ;;  %v203_v36 = vmul.f32 0.0, %v1970_v28 }
 0x168   :  { %v188_v29 = vpop.permute.xlu0 %187 }
 0x169   :  { %v190_v30 = vmul.f32 %v1970_v28, %v188_v29 }
 0x16b   :  { %192 = vrot.lane.b32.xlu1 %v190_v30, %s2116_s16 }
 0x1dd   :  { %v193_v31 = vpop.permute.xlu1 %192 }
 0x1de   :  { %v195_v32 = vadd.f32 %v193_v31, %v2249_v23 }
 0x1e0   :  { %1971 = vtanh.f32 %v195_v32 }
 0x1ea   :  { %v1972_v33 = vpop.eup %1971 }
 0x1eb   :  { %199 = vrot.lane.b32.xlu1 %v1972_v33, %s2121_s9 }
 0x25d   :  { %v200_v35 = vpop.permute.xlu1 %199 }
 0x25e   :  { %v202_v37 = vmul.f32 %v200_v35, %v197_v34 }
 0x260   :  { %v2255_v38 = vadd.f32 %v203_v36, %v202_v37 }
 0x262   :  { %v211_v39 = vpack.c.bf16 %v2255_v38, %v2255_v38  ;;  %v287_v59 = vrot.slane %v2255_v38, 6 }
 0x264   :  { %213 = vrot.lane.b32.xlu0 %v211_v39, %s2121_s9 }
 0x2d6   :  { %v214_v40 = vpop.permute.xlu0 %213 }
 0x2d7   :  { %1823 = vmatmul.mubr.msk.bf16.vlgmr.msra.gmra.mrb[4].mxu0 %vm131_vm3, %v214_v40 }
 0x2d8   :  { %1835 = vmatpush3.bf16.msra.mxu0 %v2202_v2  ;;  %1838 = vmatprep.mubr.msk.bf16.mxu0 %vm2119_vm0, %v2118_v1 }
 0x2d9   :  { %1836 = vmatprep.subr.bf16.mxu0 %v2118_v1 }
 0x2dc   :  { %1837 = vmatpush3.bf16.msra.mxu0 %v2211_v5 }
 0x2dd   :  { %1850 = vmatprep.subr.bf16.mxu0 %v2118_v1 }
 0x3aa   :  { %v252_v41 = vpop.f32.mrb[4].mxu0 }
 0x3ab   :  { %v268_v42 = vadd.f32 %v252_v41, %v2240_v12  ;;  %v1824_v43 = vpop.f32.mrb[5].mxu0  ;;  %v259_v47 = vrot.slane %v252_v41, 6 }
 0x3ac   :  { %v255_v44 = vpop.f32.mrb[6].mxu0 }
 0x3ad   :  { %v1825_v45 = vpop.f32.mrb[7].mxu0  ;;  %v270_v46 = vrot.slane %v268_v42, 6  ;;  %v261_v48 = vadd.f32 %v259_v47, %v2249_v23 }
 0x3af   :  { %271 = vrot.lane.b32.xlu1 %v270_v46, %s2116_s16  ;;  %v1707_v49 = vmul.f32 -1.442695, %v261_v48 }
 0x3b1   :  { %1973 = vpow2.f32 %v1707_v49 }
 0x3bb   :  { %v1974_v50 = vpop.eup %1973 }
 0x3bc   :  { %v265_v51 = vadd.f32 1.0, %v1974_v50 }
 0x3be   :  { %1975 = vrcp.f32 %v265_v51 }
 0x3c8   :  { %v1976_v52 = vpop.eup %1975 }
 0x3c9   :  { %v281_v58 = vsub.f32 1.0, %v1976_v52  ;;  %v289_v61 = vmul.f32 %v1976_v52, %v287_v59 }
 0x421   :  { %v272_v53 = vpop.permute.xlu1 %271 }
 0x422   :  { %v274_v54 = vmul.f32 %v1976_v52, %v272_v53 }
 0x424   :  { %276 = vrot.lane.b32.xlu0 %v274_v54, %s2116_s16 }
 0x496   :  { %v277_v55 = vpop.permute.xlu0 %276 }
 0x497   :  { %v279_v56 = vadd.f32 %v277_v55, %v2249_v23 }
 0x499   :  { %1977 = vtanh.f32 %v279_v56 }
 0x4a3   :  { %v1978_v57 = vpop.eup %1977 }
 0x4a4   :  { %283 = vrot.lane.b32.xlu1 %v1978_v57, %s2121_s9 }
 0x516   :  { %v284_v60 = vpop.permute.xlu1 %283 }
 0x517   :  { %v286_v62 = vmul.f32 %v284_v60, %v281_v58 }
 0x519   :  { %v2274_v63 = vadd.f32 %v289_v61, %v286_v62 }
 0x51b   :  { %v297_v0 = vpack.c.bf16 %v2274_v63, %v2274_v63  ;;  %v374_v28 = vrot.slane %v2274_v63, 6 }
 0x51d   :  { %v299_v3 = vrot.slane %v297_v0, 1 }
 0x51f   :  { %300 = vrot.lane.b32.xlu0 %v299_v3, %s2121_s9 }
 0x591   :  { %v301_v4 = vpop.permute.xlu0 %300 }
 0x592   :  { %1831 = vmatmul.mubr.msk.bf16.vlgmr.msra.gmra.mrb[4].mxu1 %vm131_vm3, %v301_v4 }
 0x593   :  { %1843 = vmatpush3.bf16.msra.mxu1 %v2202_v2  ;;  %1846 = vmatprep.mubr.msk.bf16.mxu1 %vm2119_vm0, %v2118_v1 }
 0x594   :  { %1844 = vmatprep.subr.bf16.mxu1 %v2118_v1 }
 0x597   :  { %1845 = vmatpush3.bf16.msra.mxu1 %v2211_v5 }
 0x598   :  { %1858 = vmatprep.subr.bf16.mxu1 %v2118_v1 }
 0x665   :  { %v339_v6 = vpop.f32.mrb[4].mxu1 }
 0x666   :  { %v355_v7 = vadd.f32 %v339_v6, %v2240_v12  ;;  %v1832_v8 = vpop.f32.mrb[5].mxu1  ;;  %v346_v14 = vrot.slane %v339_v6, 4 }
 0x667   :  { %v342_v9 = vpop.f32.mrb[6].mxu1 }
 0x668   :  { %v1833_v11 = vpop.f32.mrb[7].mxu1  ;;  %v357_v13 = vrot.slane %v355_v7, 4  ;;  %v348_v15 = vadd.f32 %v346_v14, %v2249_v23 }
 0x66a   :  { %358 = vrot.lane.b32.xlu1 %v357_v13, %s2116_s16  ;;  %v1709_v16 = vmul.f32 -1.442695, %v348_v15 }
 0x66c   :  { %1979 = vpow2.f32 %v1709_v16 }
 0x676   :  { %v1980_v18 = vpop.eup %1979 }
 0x677   :  { %v352_v19 = vadd.f32 1.0, %v1980_v18 }
 0x679   :  { %1981 = vrcp.f32 %v352_v19 }
 0x683   :  { %v1982_v20 = vpop.eup %1981 }
 0x684   :  { %v368_v27 = vsub.f32 1.0, %v1982_v20  ;;  %v376_v30 = vmul.f32 %v1982_v20, %v374_v28 }
 0x6dc   :  { %v359_v21 = vpop.permute.xlu1 %358 }
 0x6dd   :  { %v361_v22 = vmul.f32 %v1982_v20, %v359_v21 }
 0x6df   :  { %363 = vrot.lane.b32.xlu0 %v361_v22, %s2116_s16 }
 0x751   :  { %v364_v24 = vpop.permute.xlu0 %363 }
 0x752   :  { %v366_v25 = vadd.f32 %v364_v24, %v2249_v23 }
 0x754   :  { %1983 = vtanh.f32 %v366_v25 }
 0x75e   :  { %v1984_v26 = vpop.eup %1983 }
 0x75f   :  { %370 = vrot.lane.b32.xlu1 %v1984_v26, %s2121_s9 }
 0x7d1   :  { %v371_v29 = vpop.permute.xlu1 %370 }
 0x7d2   :  { %v373_v31 = vmul.f32 %v371_v29, %v368_v27 }
 0x7d4   :  { %v2293_v32 = vadd.f32 %v376_v30, %v373_v31 }
 0x7d6   :  { %v384_v33 = vpack.c.bf16 %v2293_v32, %v2293_v32  ;;  %v461_v55 = vrot.slane %v2293_v32, 6 }
 0x7d8   :  { %v386_v34 = vrot.slane %v384_v33, 2 }
 0x7da   :  { %387 = vrot.lane.b32.xlu0 %v386_v34, %s2121_s9 }
 0x84c   :  { %v388_v35 = vpop.permute.xlu0 %387 }
 0x84d   :  { %1839 = vmatmul.mubr.msk.bf16.vlgmr.msra.gmra.mrb[8].mxu0 %vm131_vm3, %v388_v35 }
 0x84e   :  { %1851 = vmatpush3.bf16.msra.mxu0 %v2202_v2  ;;  %1854 = vmatprep.mubr.msk.bf16.mxu0 %vm2119_vm0, %v2118_v1 }
 0x84f   :  { %1852 = vmatprep.subr.bf16.mxu0 %v2118_v1 }
 0x852   :  { %1853 = vmatpush3.bf16.msra.mxu0 %v2211_v5 }
 0x853   :  { %1866 = vmatprep.subr.bf16.mxu0 %v2118_v1 }
 0x920   :  { %v426_v36 = vpop.f32.mrb[8].mxu0 }
 0x921   :  { %v442_v37 = vadd.f32 %v426_v36, %v2240_v12  ;;  %v1840_v39 = vpop.f32.mrb[9].mxu0  ;;  %v433_v43 = vrot.slane %v426_v36, 2 }
 0x922   :  { %v429_v40 = vpop.f32.mrb[10].mxu0 }
 0x923   :  { %v1841_v41 = vpop.f32.mrb[11].mxu0  ;;  %v444_v42 = vrot.slane %v442_v37, 2  ;;  %v435_v44 = vadd.f32 %v433_v43, %v2249_v23 }
 0x925   :  { %445 = vrot.lane.b32.xlu1 %v444_v42, %s2116_s16  ;;  %v1711_v45 = vmul.f32 -1.442695, %v435_v44 }
 0x927   :  { %1985 = vpow2.f32 %v1711_v45 }
 0x931   :  { %v1986_v46 = vpop.eup %1985 }
 0x932   :  { %v439_v47 = vadd.f32 1.0, %v1986_v46 }
 0x934   :  { %1987 = vrcp.f32 %v439_v47 }
 0x93e   :  { %v1988_v48 = vpop.eup %1987 }
 0x93f   :  { %v455_v54 = vsub.f32 1.0, %v1988_v48  ;;  %v463_v57 = vmul.f32 %v1988_v48, %v461_v55 }
 0x997   :  { %v446_v49 = vpop.permute.xlu1 %445 }
 0x998   :  { %v448_v50 = vmul.f32 %v1988_v48, %v446_v49 }
 0x99a   :  { %450 = vrot.lane.b32.xlu0 %v448_v50, %s2116_s16 }
 0xa0c   :  { %v451_v51 = vpop.permute.xlu0 %450 }
 0xa0d   :  { %v453_v52 = vadd.f32 %v451_v51, %v2249_v23 }
 0xa0f   :  { %1989 = vtanh.f32 %v453_v52 }
 0xa19   :  { %v1990_v53 = vpop.eup %1989 }
 0xa1a   :  { %457 = vrot.lane.b32.xlu1 %v1990_v53, %s2121_s9 }
 0xa8c   :  { %v458_v56 = vpop.permute.xlu1 %457 }
 0xa8d   :  { %v460_v58 = vmul.f32 %v458_v56, %v455_v54 }
 0xa8f   :  { %v2312_v59 = vadd.f32 %v463_v57, %v460_v58 }
 0xa91   :  { %v471_v60 = vpack.c.bf16 %v2312_v59, %v2312_v59  ;;  %v544_v21 = vrot.slane %v2312_v59, 6 }
 0xa93   :  { %v473_v61 = vrot.slane %v471_v60, 3 }
 0xa95   :  { %474 = vrot.lane.b32.xlu0 %v473_v61, %s2121_s9 }
 0xb07   :  { %v475_v62 = vpop.permute.xlu0 %474 }
 0xb08   :  { %1847 = vmatmul.mubr.msk.bf16.vlgmr.msra.gmra.mrb[8].mxu1 %vm131_vm3, %v475_v62 }
 0xb09   :  { %1859 = vmatpush3.bf16.msra.mxu1 %v2202_v2  ;;  %1862 = vmatprep.mubr.msk.bf16.mxu1 %vm2119_vm0, %v2118_v1 }
 0xb0a   :  { %1860 = vmatprep.subr.bf16.mxu1 %v2118_v1 }
 0xb0d   :  { %1861 = vmatpush3.bf16.msra.mxu1 %v2211_v5 }
 0xb0e   :  { %1874 = vmatprep.subr.bf16.mxu1 %v2118_v1 }
 0xbdb   :  { %v513_v23 = vpop.f32.mrb[8].mxu1 }
 0xbdc   :  { %v1848_v0 = vpop.f32.mrb[9].mxu1  ;;  %v526_v3 = vadd.f32 %v513_v23, %v2240_v12  ;;  %v519_v7 = vadd.f32 %v513_v23, %v2245_v17 }
 0xbdd   :  { %v516_v4 = vpop.f32.mrb[10].mxu1 }
 0xbde   :  { %528 = vrot.lane.b32.xlu1 %v526_v3, %s2116_s16  ;;  %v1849_v6 = vpop.f32.mrb[11].mxu1  ;;  %v1713_v8 = vmul.f32 -1.442695, %v519_v7 }
 0xbe0   :  { %1991 = vpow2.f32 %v1713_v8 }
 0xbea   :  { %v1992_v9 = vpop.eup %1991 }
 0xbeb   :  { %v523_v11 = vadd.f32 1.0, %v1992_v9 }
 0xbed   :  { %1993 = vrcp.f32 %v523_v11 }
 0xbf7   :  { %v1994_v13 = vpop.eup %1993 }
 0xbf8   :  { %v538_v20 = vsub.f32 1.0, %v1994_v13  ;;  %v546_v24 = vmul.f32 %v1994_v13, %v544_v21 }
 0xc50   :  { %v529_v14 = vpop.permute.xlu1 %528 }
 0xc51   :  { %v531_v15 = vmul.f32 %v1994_v13, %v529_v14 }
 0xc53   :  { %533 = vrot.lane.b32.xlu0 %v531_v15, %s2116_s16 }
 0xcc5   :  { %v534_v16 = vpop.permute.xlu0 %533 }
 0xcc6   :  { %v536_v18 = vadd.f32 %v534_v16, %v2245_v17 }
 0xcc8   :  { %1995 = vtanh.f32 %v536_v18 }
 0xcd2   :  { %v1996_v19 = vpop.eup %1995 }
 0xcd3   :  { %540 = vrot.lane.b32.xlu1 %v1996_v19, %s2121_s9 }
 0xd45   :  { %v541_v22 = vpop.permute.xlu1 %540 }
 0xd46   :  { %v543_v25 = vmul.f32 %v541_v22, %v538_v20 }
 0xd48   :  { %v2331_v26 = vadd.f32 %v546_v24, %v543_v25 }
 0xd4a   :  { %v553_v27 = vpack.c.bf16 %v2331_v26, %v2331_v26  ;;  %v629_v47 = vrot.slane %v2331_v26, 6 }
 0xd4c   :  { %555 = vrot.lane.b32.xlu0 %v553_v27, %s2121_s9 }
 0xdbe   :  { %v556_v28 = vpop.permute.xlu0 %555 }
 0xdbf   :  { %1855 = vmatmul.mubr.msk.bf16.vlgmr.msra.gmra.mrb[12].mxu0 %vm131_vm3, %v556_v28 }
 0xdc0   :  { %1867 = vmatpush3.bf16.msra.mxu0 %v2202_v2  ;;  %1870 = vmatprep.mubr.msk.bf16.mxu0 %vm2119_vm0, %v2118_v1 }
 0xdc1   :  { %1868 = vmatprep.subr.bf16.mxu0 %v2118_v1 }
 0xdc4   :  { %1869 = vmatpush3.bf16.msra.mxu0 %v2211_v5 }
 0xdc5   :  { %1882 = vmatprep.subr.bf16.mxu0 %v2118_v1 }
 0xe92   :  { %v594_v29 = vpop.f32.mrb[12].mxu0 }
 0xe93   :  { %v610_v30 = vadd.f32 %v594_v29, %v2240_v12  ;;  %v1856_v31 = vpop.f32.mrb[13].mxu0  ;;  %v601_v36 = vrot.slane %v594_v29, 6 }
 0xe94   :  { %v597_v33 = vpop.f32.mrb[14].mxu0 }
 0xe95   :  { %v1857_v34 = vpop.f32.mrb[15].mxu0  ;;  %v612_v35 = vrot.slane %v610_v30, 6  ;;  %v603_v2 = vadd.f32 %v601_v36, %v2245_v17 }
 0xe97   :  { %613 = vrot.lane.b32.xlu1 %v612_v35, %s2116_s16  ;;  %v1715_v37 = vmul.f32 -1.442695, %v603_v2 }
 0xe99   :  { %1997 = vpow2.f32 %v1715_v37 }
 0xea3   :  { %v1998_v39 = vpop.eup %1997 }
 0xea4   :  { %v607_v40 = vadd.f32 1.0, %v1998_v39 }
 0xea6   :  { %1999 = vrcp.f32 %v607_v40 }
 0xeb0   :  { %v2000_v5 = vpop.eup %1999 }
 0xeb1   :  { %v623_v46 = vsub.f32 1.0, %v2000_v5  ;;  %v631_v49 = vmul.f32 %v2000_v5, %v629_v47 }
 0xf09   :  { %v614_v41 = vpop.permute.xlu1 %613 }
 0xf0a   :  { %v616_v42 = vmul.f32 %v2000_v5, %v614_v41 }
 0xf0c   :  { %618 = vrot.lane.b32.xlu0 %v616_v42, %s2116_s16 }
 0xf7e   :  { %v619_v43 = vpop.permute.xlu0 %618 }
 0xf7f   :  { %v621_v44 = vadd.f32 %v619_v43, %v2245_v17 }
 0xf81   :  { %2001 = vtanh.f32 %v621_v44  ;;  %v1966_v44 = vld [vmem:[#allocation4 + $0x8] sm:$0xff]  }
 0xf8b   :  { %v2002_v45 = vpop.eup %2001 }
 0xf8c   :  { %625 = vrot.lane.b32.xlu1 %v2002_v45, %s2121_s9 }
 0xffe   :  { %v626_v48 = vpop.permute.xlu1 %625 }
 0xfff   :  { %v628_v50 = vmul.f32 %v626_v48, %v623_v46  ;;  %v1722_v48 = vld [vmem:[%s2615_s5 + $0x1] ss:$0 sm:$0xff] }
0x1001   :  { %v2350_v51 = vadd.f32 %v631_v49, %v628_v50 }
0x1003   :  { %v638_v52 = vpack.c.bf16 %v2350_v51, %v2350_v51  ;;  %v715_v15 = vrot.slane %v2350_v51, 6 }
0x1005   :  { %v640_v53 = vrot.slane %v638_v52, 1 }
0x1007   :  { %641 = vrot.lane.b32.xlu0 %v640_v53, %s2121_s9 }
0x1079   :  { %v642_v54 = vpop.permute.xlu0 %641 }
0x107a   :  { %1863 = vmatmul.mubr.msk.bf16.vlgmr.msra.gmra.mrb[12].mxu1 %vm131_vm3, %v642_v54 }
0x107b   :  { %1878 = vmatprep.mubr.msk.bf16.mxu1 %vm2119_vm0, %v2118_v1 }
0x114d   :  { %v680_v55 = vpop.f32.mrb[12].mxu1 }
0x114e   :  { %v696_v56 = vadd.f32 %v680_v55, %v2240_v12  ;;  %v1864_v57 = vpop.f32.mrb[13].mxu1  ;;  %v687_v62 = vrot.slane %v680_v55, 4 }
0x114f   :  { %v683_v58 = vpop.f32.mrb[14].mxu1 }
0x1150   :  { %v1865_v60 = vpop.f32.mrb[15].mxu1  ;;  %v698_v61 = vrot.slane %v696_v56, 4  ;;  %v689_v23 = vadd.f32 %v687_v62, %v2245_v17 }
0x1152   :  { %699 = vrot.lane.b32.xlu1 %v698_v61, %s2116_s16  ;;  %v1717_v0 = vmul.f32 -1.442695, %v689_v23 }
0x1154   :  { %2003 = vpow2.f32 %v1717_v0  ;;  %v1723_v0 = vld [vmem:[%s2614_s4 + $0x1] ss:$0 sm:$0xff] }
0x115e   :  { %v2004_v3 = vpop.eup %2003 }
0x115f   :  { %v693_v4 = vadd.f32 1.0, %v2004_v3 }
0x1161   :  { %2005 = vrcp.f32 %v693_v4 }
0x116b   :  { %v2006_v6 = vpop.eup %2005 }
0x116c   :  { %v709_v14 = vsub.f32 1.0, %v2006_v6  ;;  %v717_v18 = vmul.f32 %v2006_v6, %v715_v15 }
0x11c4   :  { %v700_v7 = vpop.permute.xlu1 %699 }
0x11c5   :  { %v702_v8 = vmul.f32 %v2006_v6, %v700_v7 }
0x11c7   :  { %704 = vrot.lane.b32.xlu0 %v702_v8, %s2116_s16 }
0x1239   :  { %v705_v9 = vpop.permute.xlu0 %704 }
0x123a   :  { %v707_v11 = vadd.f32 %v705_v9, %v2245_v17 }
0x123c   :  { %2007 = vtanh.f32 %v707_v11 }
0x1246   :  { %v2008_v13 = vpop.eup %2007 }
0x1247   :  { %711 = vrot.lane.b32.xlu1 %v2008_v13, %s2121_s9 }
0x12b9   :  { %v712_v16 = vpop.permute.xlu1 %711 }
0x12ba   :  { %v714_v19 = vmul.f32 %v712_v16, %v709_v14 }
0x12bc   :  { %v2365_v20 = vadd.f32 %v717_v18, %v714_v19 }
0x12be   :  { %v724_v21 = vpack.c.bf16 %v2365_v20, %v2365_v20 }
0x12c0   :  { %v726_v22 = vrot.slane %v724_v21, 2 }
0x12c2   :  { %727 = vrot.lane.b32.xlu0 %v726_v22, %s2121_s9 }
0x1334   :  { %v728_v24 = vpop.permute.xlu0 %727 }
0x1335   :  { %1871 = vmatmul.mubr.msk.bf16.vlgmr.msra.gmra.mrb[16].mxu0 %vm131_vm3, %v728_v24 }
0x1336   :  { %1886 = vmatprep.mubr.msk.bf16.mxu0 %vm2119_vm0, %v2118_v1 }
0x1408   :  { %v766_v25 = vpop.f32.mrb[16].mxu0 }
0x1409   :  { %v782_v27 = vadd.f32 %v766_v25, %v2240_v12  ;;  %v1872_v28 = vpop.f32.mrb[17].mxu0  ;;  %v773_v33 = vrot.slane %v766_v25, 2 }
0x140a   :  { %v769_v29 = vpop.f32.mrb[18].mxu0 }
0x140b   :  { %v1873_v30 = vpop.f32.mrb[19].mxu0  ;;  %v784_v31 = vrot.slane %v782_v27, 2  ;;  %v775_v34 = vadd.f32 %v773_v33, %v2245_v17 }
0x140d   :  { %785 = vrot.lane.b32.xlu1 %v784_v31, %s2116_s16  ;;  %v1719_v35 = vmul.f32 -1.442695, %v775_v34 }
0x140f   :  { %2009 = vpow2.f32 %v1719_v35 }
0x1419   :  { %v2010_v36 = vpop.eup %2009 }
0x141a   :  { %v779_v2 = vadd.f32 1.0, %v2010_v36 }
0x141c   :  { %2011 = vrcp.f32 %v779_v2 }
0x1426   :  { %v2012_v37 = vpop.eup %2011 }
0x147f   :  { %v786_v39 = vpop.permute.xlu1 %785 }
0x1480   :  { %v788_v40 = vmul.f32 %v2012_v37, %v786_v39 }
0x1482   :  { %790 = vrot.lane.b32.xlu0 %v788_v40, %s2116_s16 }
0x1486   :  { %206 = vrot.lane.b32.xlu0 %v2255_v38, %s2121_s9 }
0x148a   :  { %379 = vrot.lane.b32.xlu0 %v2293_v32, %s2121_s9 }
0x148e   :  { %549 = vrot.lane.b32.xlu0 %v2331_v26, %s2121_s9  ;;  %v2392_v26 = vld [vmem:[%s2613_s3 + $0x10] sm:$0xff]  }
0x148f   :  { %1883 = vmatpush3.bf16.msra.mxu0 %v2392_v26 }
0x1490   :  { %1884 = vmatprep.subr.bf16.mxu0 %v2118_v1 }
0x1492   :  { %720 = vrot.lane.b32.xlu0 %v2365_v20, %s2121_s9 }
0x1496   :  { %952 = vrot.lane.b32.xlu0 %v1722_v48, %s2116_s16 }
0x14f4   :  { %v791_v12 = vpop.permute.xlu0 %790 }
0x14f5   :  { %v793_v5 = vadd.f32 %v791_v12, %v2245_v17  ;;  %v2399_v17 = vld [vmem:[%s2613_s3 + $0x18] sm:$0xff]  }
0x14f6   :  { %1885 = vmatpush3.bf16.msra.mxu0 %v2399_v17 }
0x14f7   :  { %2013 = vtanh.f32 %v793_v5  ;;  %1898 = vmatprep.subr.bf16.mxu0 %v2118_v1 }
0x14f8   :  { %v207_v41 = vpop.permute.xlu0 %206 }
0x14f9   :  { %210 = vst.msk [vmem:[#allocation2] sm:$0x3] %vm209_vm4, %v207_v41  ;;  %1887 = vmatmul.mubr.bf16.vlgmr.msra.gmra.mrb[20].mxu0 %v2120_v10  ;;  %v795_v10 = vsub.f32 1.0, %v2012_v37 }
0x14fa   :  { %1899 = vmatpush3.bf16.msra.mxu0 %v2392_v26  ;;  %1902 = vmatprep.mubr.msk.bf16.mxu0 %vm2119_vm0, %v2118_v1 }
0x14fb   :  { %1900 = vmatprep.subr.bf16.mxu0 %v2118_v1 }
0x14fc   :  { %v380_v42 = vpop.permute.xlu0 %379 }
0x14fd   :  { %383 = vst.msk [vmem:[#allocation2] sm:$0x30] %vm382_vm5, %v380_v42 }
0x14fe   :  { %1901 = vmatpush3.bf16.msra.mxu0 %v2399_v17 }
0x14ff   :  { %1914 = vmatprep.subr.bf16.mxu0 %v2118_v1 }
0x1500   :  { %v550_v38 = vpop.permute.xlu0 %549 }
0x1501   :  { %v2014_v32 = vpop.eup %2013  ;;  %552 = vst.msk [vmem:[#allocation2 + $0x8] sm:$0x3] %vm209_vm4, %v550_v38 }
0x1502   :  { %797 = vrot.lane.b32.xlu1 %v2014_v32, %s2121_s9 }
0x1504   :  { %v721_v43 = vpop.permute.xlu0 %720 }
0x1505   :  { %723 = vst.msk [vmem:[#allocation2 + $0x8] sm:$0x30] %vm382_vm5, %v721_v43 }
0x1506   :  { %292 = vrot.lane.b32.xlu1 %v2274_v63, %s2121_s9  ;;  %v1965_v63 = vld [vmem:[#allocation4] sm:$0xff]  }
0x1507   :  { %1875 = vmatpush3.bf16.msra.mxu1 %v1965_v63 }
0x1508   :  { %1876 = vmatprep.subr.bf16.mxu1 %v2118_v1  ;;  %v2429_v57 = vpop.permute.xlu0 %952 }
0x150a   :  { %466 = vrot.lane.b32.xlu1 %v2312_v59, %s2121_s9  ;;  %v801_v59 = vrot.slane %v2365_v20, 6 }
0x150b   :  { %1877 = vmatpush3.bf16.msra.mxu1 %v1966_v44 }
0x150c   :  { %1890 = vmatprep.subr.bf16.mxu1 %v2118_v1  ;;  %v803_v46 = vmul.f32 %v2012_v37, %v801_v59 }
0x150e   :  { %634 = vrot.lane.b32.xlu1 %v2350_v51, %s2121_s9 }
0x1574   :  { %v798_v45 = vpop.permute.xlu1 %797 }
0x1575   :  { %v800_v47 = vmul.f32 %v798_v45, %v795_v10 }
0x1577   :  { %v804_v49 = vadd.f32 %v803_v46, %v800_v47 }
0x1578   :  { %v293_v50 = vpop.permute.xlu1 %292 }
0x1579   :  { %296 = vst.msk [vmem:[#allocation2] sm:$0xc] %vm295_vm6, %v293_v50  ;;  %806 = vrot.lane.b32.xlu1 %v804_v49, %s2121_s9 }
0x157c   :  { %v467_v51 = vpop.permute.xlu1 %466 }
0x157d   :  { %470 = vst.msk [vmem:[#allocation2] sm:$0xc0] %vm469_vm7, %v467_v51 }
0x1580   :  { %v635_v52 = vpop.permute.xlu1 %634 }
0x1581   :  { %637 = vst.msk [vmem:[#allocation2 + $0x8] sm:$0xc] %vm295_vm6, %v635_v52 }
0x1584   :  { %v819_v61 = vld [vmem:[#allocation2] sm:$0xff] }
0x15cc   :  { %v939_v53 = vpop.f32.mrb[20].mxu0 }
0x15cd   :  { %v1888_v54 = vpop.f32.mrb[21].mxu0  ;;  %v955_v58 = vadd.f32 %v2429_v57, %v939_v53 }
0x15ce   :  { %v942_v55 = vpop.f32.mrb[22].mxu0 }
0x15cf   :  { %v1889_v56 = vpop.f32.mrb[23].mxu0  ;;  %957 = vrot.lane.b32.xlu1 %v955_v58, %s2116_s16 }
0x15eb   :  { %v807_v60 = vpop.permute.xlu1 %806 }
0x15ec   :  { %809 = vst.msk [vmem:[#allocation2 + $0x8] sm:$0xc0] %vm469_vm7, %v807_v60 }
0x15f3   :  { %v820_v62 = vld [vmem:[#allocation2 + $0x8] sm:$0xff] }
0x15f4   :  { %v825_v23 = vpack.c.bf16 %v820_v62, %v819_v61 }
0x15f6   :  { %1879 = vmatmul.mubr.msk.bf16.vlgmr.msra.gmra.mrb[16].mxu1 %vm131_vm3, %v825_v23 }
0x15f7   :  { %1891 = vmatpush3.bf16.msra.mxu1 %v2392_v26  ;;  %1894 = vmatprep.mubr.msk.bf16.mxu1 %vm2119_vm0, %v2118_v1 }
0x15f8   :  { %1892 = vmatprep.subr.bf16.mxu1 %v2118_v1 }
0x15fb   :  { %1893 = vmatpush3.bf16.msra.mxu1 %v2399_v17 }
0x15fc   :  { %1906 = vmatprep.subr.bf16.mxu1 %v2118_v1 }
0x1641   :  { %v958_v16 = vpop.permute.xlu1 %957 }
0x16c9   :  { %v881_v3 = vpop.f32.mrb[16].mxu1 }
0x16ca   :  { %v2444_v4 = vadd.f32 %v1723_v0, %v881_v3  ;;  %v1880_v6 = vpop.f32.mrb[17].mxu1 }
0x16cb   :  { %v884_v7 = vpop.f32.mrb[18].mxu1 }
0x16cc   :  { %v2446_v8 = vadd.f32 %v1723_v0, %v884_v7  ;;  %v1881_v9 = vpop.f32.mrb[19].mxu1  ;;  %v945_v11 = vadd.f32 %v939_v53, %v2444_v4 }
0x16ce   :  { %v1733_v13 = vmul.f32 -1.442695, %v945_v11 }
0x16d0   :  { %2015 = vpow2.f32 %v1733_v13 }
0x16da   :  { %v2016_v14 = vpop.eup %2015 }
0x16db   :  { %v949_v15 = vadd.f32 1.0, %v2016_v14 }
0x16dd   :  { %2017 = vrcp.f32 %v949_v15 }
0x16e7   :  { %v2018_v18 = vpop.eup %2017 }
0x16e8   :  { %v960_v19 = vmul.f32 %v2018_v18, %v958_v16  ;;  %v967_v24 = vsub.f32 1.0, %v2018_v18  ;;  %v973_v27 = vmul.f32 0.0, %v2018_v18 }
0x16ea   :  { %962 = vrot.lane.b32.xlu0 %v960_v19, %s2116_s16 }
0x175c   :  { %v963_v20 = vpop.permute.xlu0 %962 }
0x175d   :  { %v965_v21 = vadd.f32 %v963_v20, %v2444_v4 }
0x175f   :  { %2019 = vtanh.f32 %v965_v21 }
0x1769   :  { %v2020_v22 = vpop.eup %2019 }
0x176a   :  { %969 = vrot.lane.b32.xlu1 %v2020_v22, %s2121_s9 }
0x17dc   :  { %v970_v25 = vpop.permute.xlu1 %969 }
0x17dd   :  { %v972_v28 = vmul.f32 %v970_v25, %v967_v24 }
0x17df   :  { %v2452_v29 = vadd.f32 %v973_v27, %v972_v28 }
0x17e1   :  { %v998_v30 = vpack.c.bf16 %v2452_v29, %v2452_v29  ;;  %v1075_v59 = vrot.slane %v2452_v29, 6 }
0x17e3   :  { %1000 = vrot.lane.b32.xlu0 %v998_v30, %s2121_s9 }
0x1855   :  { %v1001_v31 = vpop.permute.xlu0 %1000 }
0x1856   :  { %1895 = vmatmul.mubr.msk.bf16.vlgmr.msra.gmra.mrb[20].mxu1 %vm131_vm3, %v1001_v31 }
0x1857   :  { %1907 = vmatpush3.bf16.msra.mxu1 %v2392_v26  ;;  %1910 = vmatprep.mubr.msk.bf16.mxu1 %vm2119_vm0, %v2118_v1 }
0x1858   :  { %1908 = vmatprep.subr.bf16.mxu1 %v2118_v1 }
0x185b   :  { %1909 = vmatpush3.bf16.msra.mxu1 %v2399_v17 }
0x185c   :  { %1922 = vmatprep.subr.bf16.mxu1 %v2118_v1 }
0x1929   :  { %v1039_v33 = vpop.f32.mrb[20].mxu1 }
0x192a   :  { %v1055_v34 = vadd.f32 %v1039_v33, %v2429_v57  ;;  %v1896_v35 = vpop.f32.mrb[21].mxu1  ;;  %v1046_v39 = vrot.slane %v1039_v33, 6 }
0x192b   :  { %v1042_v36 = vpop.f32.mrb[22].mxu1 }
0x192c   :  { %v1897_v2 = vpop.f32.mrb[23].mxu1  ;;  %v1057_v37 = vrot.slane %v1055_v34, 6  ;;  %v1048_v40 = vadd.f32 %v1046_v39, %v2444_v4 }
0x192e   :  { %1058 = vrot.lane.b32.xlu1 %v1057_v37, %s2116_s16  ;;  %v1737_v12 = vmul.f32 -1.442695, %v1048_v40 }
0x1930   :  { %2021 = vpow2.f32 %v1737_v12 }
0x193a   :  { %v2022_v5 = vpop.eup %2021 }
0x193b   :  { %v1052_v41 = vadd.f32 1.0, %v2022_v5 }
0x193d   :  { %2023 = vrcp.f32 %v1052_v41 }
0x1947   :  { %v2024_v42 = vpop.eup %2023 }
0x1948   :  { %v1068_v10 = vsub.f32 1.0, %v2024_v42  ;;  %v1077_v46 = vmul.f32 %v2024_v42, %v1075_v59 }
0x19a0   :  { %v1059_v38 = vpop.permute.xlu1 %1058 }
0x19a1   :  { %v1061_v32 = vmul.f32 %v2024_v42, %v1059_v38 }
0x19a3   :  { %1063 = vrot.lane.b32.xlu0 %v1061_v32, %s2116_s16 }
0x1a15   :  { %v1064_v43 = vpop.permute.xlu0 %1063 }
0x1a16   :  { %v1066_v63 = vadd.f32 %v1064_v43, %v2444_v4 }
0x1a18   :  { %2025 = vtanh.f32 %v1066_v63 }
0x1a22   :  { %v2026_v44 = vpop.eup %2025 }
0x1a23   :  { %1070 = vrot.lane.b32.xlu1 %v2026_v44, %s2121_s9 }
0x1a95   :  { %v1071_v45 = vpop.permute.xlu1 %1070 }
0x1a96   :  { %v1073_v47 = vmul.f32 %v1071_v45, %v1068_v10 }
0x1a98   :  { %v2471_v48 = vadd.f32 %v1077_v46, %v1073_v47 }
0x1a9a   :  { %v1088_v49 = vpack.c.bf16 %v2471_v48, %v2471_v48  ;;  %v1166_v15 = vrot.slane %v2471_v48, 6 }
0x1a9c   :  { %v1090_v50 = vrot.slane %v1088_v49, 1 }
0x1a9e   :  { %1091 = vrot.lane.b32.xlu0 %v1090_v50, %s2121_s9 }
0x1b10   :  { %v1092_v51 = vpop.permute.xlu0 %1091 }
0x1b11   :  { %1903 = vmatmul.mubr.msk.bf16.vlgmr.msra.gmra.mrb[24].mxu0 %vm131_vm3, %v1092_v51 }
0x1b12   :  { %1915 = vmatpush3.bf16.msra.mxu0 %v2392_v26  ;;  %1918 = vmatprep.mubr.msk.bf16.mxu0 %vm2119_vm0, %v2118_v1 }
0x1b13   :  { %1916 = vmatprep.subr.bf16.mxu0 %v2118_v1 }
0x1b16   :  { %1917 = vmatpush3.bf16.msra.mxu0 %v2399_v17 }
0x1b17   :  { %1930 = vmatprep.subr.bf16.mxu0 %v2118_v1 }
0x1be4   :  { %v1130_v52 = vpop.f32.mrb[24].mxu0 }
0x1be5   :  { %v1146_v53 = vadd.f32 %v1130_v52, %v2429_v57  ;;  %v1904_v54 = vpop.f32.mrb[25].mxu0  ;;  %v1137_v60 = vrot.slane %v1130_v52, 4 }
0x1be6   :  { %v1133_v55 = vpop.f32.mrb[26].mxu0 }
0x1be7   :  { %v1905_v56 = vpop.f32.mrb[27].mxu0  ;;  %v1148_v58 = vrot.slane %v1146_v53, 4  ;;  %v1139_v61 = vadd.f32 %v1137_v60, %v2444_v4 }
0x1be9   :  { %1149 = vrot.lane.b32.xlu1 %v1148_v58, %s2116_s16  ;;  %v1739_v62 = vmul.f32 -1.442695, %v1139_v61 }
0x1beb   :  { %2027 = vpow2.f32 %v1739_v62 }
0x1bf5   :  { %v2028_v23 = vpop.eup %2027 }
0x1bf6   :  { %v1143_v0 = vadd.f32 1.0, %v2028_v23 }
0x1bf8   :  { %2029 = vrcp.f32 %v1143_v0 }
0x1c02   :  { %v2030_v3 = vpop.eup %2029 }
0x1c03   :  { %v1159_v14 = vsub.f32 1.0, %v2030_v3  ;;  %v1168_v18 = vmul.f32 %v2030_v3, %v1166_v15 }
0x1c5b   :  { %v1150_v6 = vpop.permute.xlu1 %1149 }
0x1c5c   :  { %v1152_v7 = vmul.f32 %v2030_v3, %v1150_v6 }
0x1c5e   :  { %1154 = vrot.lane.b32.xlu0 %v1152_v7, %s2116_s16 }
0x1cd0   :  { %v1155_v9 = vpop.permute.xlu0 %1154 }
0x1cd1   :  { %v1157_v11 = vadd.f32 %v1155_v9, %v2444_v4 }
0x1cd3   :  { %2031 = vtanh.f32 %v1157_v11 }
0x1cdd   :  { %v2032_v13 = vpop.eup %2031 }
0x1cde   :  { %1161 = vrot.lane.b32.xlu1 %v2032_v13, %s2121_s9 }
0x1d50   :  { %v1162_v16 = vpop.permute.xlu1 %1161 }
0x1d51   :  { %v1164_v19 = vmul.f32 %v1162_v16, %v1159_v14 }
0x1d53   :  { %v2490_v20 = vadd.f32 %v1168_v18, %v1164_v19 }
0x1d55   :  { %v1179_v21 = vpack.c.bf16 %v2490_v20, %v2490_v20  ;;  %v1257_v32 = vrot.slane %v2490_v20, 6 }
0x1d57   :  { %v1181_v22 = vrot.slane %v1179_v21, 2 }
0x1d59   :  { %1182 = vrot.lane.b32.xlu0 %v1181_v22, %s2121_s9 }
0x1dcb   :  { %v1183_v24 = vpop.permute.xlu0 %1182 }
0x1dcc   :  { %1911 = vmatmul.mubr.msk.bf16.vlgmr.msra.gmra.mrb[24].mxu1 %vm131_vm3, %v1183_v24 }
0x1dcd   :  { %1923 = vmatpush3.bf16.msra.mxu1 %v2392_v26  ;;  %1926 = vmatprep.mubr.msk.bf16.mxu1 %vm2119_vm0, %v2118_v1 }
0x1dce   :  { %1924 = vmatprep.subr.bf16.mxu1 %v2118_v1 }
0x1dd1   :  { %1925 = vmatpush3.bf16.msra.mxu1 %v2399_v17 }
0x1dd2   :  { %1938 = vmatprep.subr.bf16.mxu1 %v2118_v1 }
0x1e9f   :  { %v1221_v25 = vpop.f32.mrb[24].mxu1 }
0x1ea0   :  { %v1237_v27 = vadd.f32 %v1221_v25, %v2429_v57  ;;  %v1912_v28 = vpop.f32.mrb[25].mxu1  ;;  %v1228_v34 = vrot.slane %v1221_v25, 2 }
0x1ea1   :  { %v1224_v30 = vpop.f32.mrb[26].mxu1 }
0x1ea2   :  { %v1913_v31 = vpop.f32.mrb[27].mxu1  ;;  %v1239_v33 = vrot.slane %v1237_v27, 2  ;;  %v1230_v35 = vadd.f32 %v1228_v34, %v2444_v4 }
0x1ea4   :  { %1240 = vrot.lane.b32.xlu1 %v1239_v33, %s2116_s16  ;;  %v1741_v36 = vmul.f32 -1.442695, %v1230_v35 }
0x1ea6   :  { %2033 = vpow2.f32 %v1741_v36 }
0x1eb0   :  { %v2034_v2 = vpop.eup %2033 }
0x1eb1   :  { %v1234_v37 = vadd.f32 1.0, %v2034_v2 }
0x1eb3   :  { %2035 = vrcp.f32 %v1234_v37 }
0x1ebd   :  { %v2036_v39 = vpop.eup %2035 }
0x1ebe   :  { %v1250_v38 = vsub.f32 1.0, %v2036_v39  ;;  %v1259_v63 = vmul.f32 %v2036_v39, %v1257_v32 }
0x1f16   :  { %v1241_v40 = vpop.permute.xlu1 %1240 }
0x1f17   :  { %v1243_v12 = vmul.f32 %v2036_v39, %v1241_v40 }
0x1f19   :  { %1245 = vrot.lane.b32.xlu0 %v1243_v12, %s2116_s16 }
0x1f8b   :  { %v1246_v5 = vpop.permute.xlu0 %1245 }
0x1f8c   :  { %v1248_v41 = vadd.f32 %v1246_v5, %v2444_v4 }
0x1f8e   :  { %2037 = vtanh.f32 %v1248_v41 }
0x1f98   :  { %v2038_v42 = vpop.eup %2037 }
0x1f99   :  { %1252 = vrot.lane.b32.xlu1 %v2038_v42, %s2121_s9 }
0x200b   :  { %v1253_v43 = vpop.permute.xlu1 %1252 }
0x200c   :  { %v1255_v44 = vmul.f32 %v1253_v43, %v1250_v38 }
0x200e   :  { %v2509_v10 = vadd.f32 %v1259_v63, %v1255_v44 }
0x2010   :  { %v1270_v59 = vpack.c.bf16 %v2509_v10, %v2509_v10  ;;  %v1344_v3 = vrot.slane %v2509_v10, 6 }
0x2012   :  { %v1272_v45 = vrot.slane %v1270_v59, 3 }
0x2014   :  { %1273 = vrot.lane.b32.xlu0 %v1272_v45, %s2121_s9 }
0x2086   :  { %v1274_v46 = vpop.permute.xlu0 %1273 }
0x2087   :  { %1919 = vmatmul.mubr.msk.bf16.vlgmr.msra.gmra.mrb[28].mxu0 %vm131_vm3, %v1274_v46 }
0x2088   :  { %1931 = vmatpush3.bf16.msra.mxu0 %v2392_v26  ;;  %1934 = vmatprep.mubr.msk.bf16.mxu0 %vm2119_vm0, %v2118_v1 }
0x2089   :  { %1932 = vmatprep.subr.bf16.mxu0 %v2118_v1 }
0x208c   :  { %1933 = vmatpush3.bf16.msra.mxu0 %v2399_v17 }
0x215a   :  { %v1312_v4 = vpop.f32.mrb[28].mxu0 }
0x215b   :  { %v1920_v47 = vpop.f32.mrb[29].mxu0  ;;  %v1325_v49 = vadd.f32 %v1312_v4, %v2429_v57  ;;  %v1318_v52 = vadd.f32 %v1312_v4, %v2446_v8 }
0x215c   :  { %v1315_v50 = vpop.f32.mrb[30].mxu0 }
0x215d   :  { %1327 = vrot.lane.b32.xlu1 %v1325_v49, %s2116_s16  ;;  %v1921_v51 = vpop.f32.mrb[31].mxu0  ;;  %v1743_v53 = vmul.f32 -1.442695, %v1318_v52 }
0x215f   :  { %2039 = vpow2.f32 %v1743_v53 }
0x2169   :  { %v2040_v54 = vpop.eup %2039 }
0x216a   :  { %v1322_v55 = vadd.f32 1.0, %v2040_v54 }
0x216c   :  { %2041 = vrcp.f32 %v1322_v55 }
0x2176   :  { %v2042_v56 = vpop.eup %2041 }
0x2177   :  { %v1337_v0 = vsub.f32 1.0, %v2042_v56  ;;  %v1346_v7 = vmul.f32 %v2042_v56, %v1344_v3 }
0x21cf   :  { %v1328_v58 = vpop.permute.xlu1 %1327 }
0x21d0   :  { %v1330_v60 = vmul.f32 %v2042_v56, %v1328_v58 }
0x21d2   :  { %1332 = vrot.lane.b32.xlu0 %v1330_v60, %s2116_s16 }
0x2244   :  { %v1333_v61 = vpop.permute.xlu0 %1332 }
0x2245   :  { %v1335_v62 = vadd.f32 %v1333_v61, %v2446_v8 }
0x2247   :  { %2043 = vtanh.f32 %v1335_v62 }
0x2251   :  { %v2044_v23 = vpop.eup %2043 }
0x2252   :  { %1339 = vrot.lane.b32.xlu1 %v2044_v23, %s2121_s9 }
0x22c4   :  { %v1340_v6 = vpop.permute.xlu1 %1339 }
0x22c5   :  { %v1342_v9 = vmul.f32 %v1340_v6, %v1337_v0 }
0x22c7   :  { %v2527_v11 = vadd.f32 %v1346_v7, %v1342_v9 }
0x22c9   :  { %v1357_v13 = vpack.c.bf16 %v2527_v11, %v2527_v11  ;;  %v1434_v36 = vrot.slane %v2527_v11, 6 }
0x22cb   :  { %1359 = vrot.lane.b32.xlu0 %v1357_v13, %s2121_s9 }
0x233d   :  { %v1360_v14 = vpop.permute.xlu0 %1359 }
0x233e   :  { %1927 = vmatmul.mubr.msk.bf16.vlgmr.msra.gmra.mrb[28].mxu1 %vm131_vm3, %v1360_v14 }
0x233f   :  { %1939 = vmatpush3.bf16.msra.mxu1 %v2392_v26  ;;  %1942 = vmatprep.mubr.msk.bf16.mxu1 %vm2119_vm0, %v2118_v1 }
0x2340   :  { %1940 = vmatprep.subr.bf16.mxu1 %v2118_v1 }
0x2343   :  { %1941 = vmatpush3.bf16.msra.mxu1 %v2399_v17 }
0x2411   :  { %v1398_v15 = vpop.f32.mrb[28].mxu1 }
0x2412   :  { %v1414_v16 = vadd.f32 %v1398_v15, %v2429_v57  ;;  %v1928_v18 = vpop.f32.mrb[29].mxu1  ;;  %v1405_v24 = vrot.slane %v1398_v15, 6 }
0x2413   :  { %v1401_v19 = vpop.f32.mrb[30].mxu1 }
0x2414   :  { %v1929_v21 = vpop.f32.mrb[31].mxu1  ;;  %v1416_v22 = vrot.slane %v1414_v16, 6  ;;  %v1407_v25 = vadd.f32 %v1405_v24, %v2446_v8  ;;  %v1734_v16 = vld [vmem:[%s2616_s6] ss:$0 sm:$0xff]  ;;  %s2123_s6 = smov 2  }
0x2416   :  { %1417 = vrot.lane.b32.xlu1 %v1416_v22, %s2116_s16  ;;  %v1745_v26 = vmul.f32 -1.442695, %v1407_v25 }
0x2418   :  { %2045 = vpow2.f32 %v1745_v26 }
0x2422   :  { %v2046_v27 = vpop.eup %2045 }
0x2423   :  { %v1411_v28 = vadd.f32 1.0, %v2046_v27 }
0x2425   :  { %2047 = vrcp.f32 %v1411_v28 }
0x242f   :  { %v2048_v1 = vpop.eup %2047 }
0x2430   :  { %v1427_v35 = vsub.f32 1.0, %v2048_v1  ;;  %v1436_v37 = vmul.f32 %v2048_v1, %v1434_v36 }
0x2488   :  { %v1418_v30 = vpop.permute.xlu1 %1417 }
0x2489   :  { %v1420_v17 = vmul.f32 %v2048_v1, %v1418_v30 }
0x248b   :  { %1422 = vrot.lane.b32.xlu0 %v1420_v17, %s2116_s16 }
0x24fd   :  { %v1423_v31 = vpop.permute.xlu0 %1422 }
0x24fe   :  { %v1425_v33 = vadd.f32 %v1423_v31, %v2446_v8 }
0x2500   :  { %2049 = vtanh.f32 %v1425_v33 }
0x250a   :  { %v2050_v34 = vpop.eup %2049 }
0x250b   :  { %1429 = vrot.lane.b32.xlu1 %v2050_v34, %s2121_s9 }
0x257d   :  { %v1430_v2 = vpop.permute.xlu1 %1429 }
0x257e   :  { %v1432_v39 = vmul.f32 %v1430_v2, %v1427_v35 }
0x2580   :  { %v2545_v40 = vadd.f32 %v1436_v37, %v1432_v39 }
0x2582   :  { %v1447_v12 = vpack.c.bf16 %v2545_v40, %v2545_v40  ;;  %v1525_v56 = vrot.slane %v2545_v40, 6 }
0x2584   :  { %v1449_v5 = vrot.slane %v1447_v12, 1 }
0x2586   :  { %1450 = vrot.lane.b32.xlu0 %v1449_v5, %s2121_s9 }
0x25f8   :  { %v1451_v41 = vpop.permute.xlu0 %1450 }
0x25f9   :  { %1935 = vmatmul.mubr.msk.bf16.vlgmr.msra.gmra.mrb[32].mxu0 %vm131_vm3, %v1451_v41 }
0x26cc   :  { %v1489_v42 = vpop.f32.mrb[32].mxu0 }
0x26cd   :  { %v1505_v38 = vadd.f32 %v1489_v42, %v2429_v57  ;;  %v1936_v32 = vpop.f32.mrb[33].mxu0  ;;  %v1496_v59 = vrot.slane %v1489_v42, 4 }
0x26ce   :  { %v1492_v43 = vpop.f32.mrb[34].mxu0 }
0x26cf   :  { %v1937_v63 = vpop.f32.mrb[35].mxu0  ;;  %v1507_v44 = vrot.slane %v1505_v38, 4  ;;  %v1498_v45 = vadd.f32 %v1496_v59, %v2446_v8 }
0x26d1   :  { %1508 = vrot.lane.b32.xlu1 %v1507_v44, %s2116_s16  ;;  %v1747_v46 = vmul.f32 -1.442695, %v1498_v45 }
0x26d3   :  { %2051 = vpow2.f32 %v1747_v46 }
0x26dd   :  { %v2052_v4 = vpop.eup %2051 }
0x26de   :  { %v1502_v47 = vadd.f32 1.0, %v2052_v4 }
0x26e0   :  { %2053 = vrcp.f32 %v1502_v47  ;;  %v1735_v47 = vld [vmem:[#allocation3] ss:$0 sm:$0xff] }
0x26ea   :  { %v2054_v49 = vpop.eup %2053 }
0x26eb   :  { %v1518_v55 = vsub.f32 1.0, %v2054_v49  ;;  %v1527_v60 = vmul.f32 %v2054_v49, %v1525_v56 }
0x2743   :  { %v1509_v50 = vpop.permute.xlu1 %1508 }
0x2744   :  { %v1511_v51 = vmul.f32 %v2054_v49, %v1509_v50 }
0x2746   :  { %1513 = vrot.lane.b32.xlu0 %v1511_v51, %s2116_s16 }
0x27b8   :  { %v1514_v52 = vpop.permute.xlu0 %1513 }
0x27b9   :  { %v1516_v53 = vadd.f32 %v1514_v52, %v2446_v8 }
0x27bb   :  { %2055 = vtanh.f32 %v1516_v53 }
0x27c5   :  { %v2056_v54 = vpop.eup %2055 }
0x27c6   :  { %1520 = vrot.lane.b32.xlu1 %v2056_v54, %s2121_s9 }
0x2838   :  { %v1521_v58 = vpop.permute.xlu1 %1520 }
0x2839   :  { %v1523_v61 = vmul.f32 %v1521_v58, %v1518_v55 }
0x283b   :  { %v2558_v62 = vadd.f32 %v1527_v60, %v1523_v61 }
0x283d   :  { %v1538_v23 = vpack.c.bf16 %v2558_v62, %v2558_v62  ;;  %v1616_v32 = vrot.slane %v2558_v62, 6 }
0x283f   :  { %v1540_v0 = vrot.slane %v1538_v23, 2 }
0x2841   :  { %1541 = vrot.lane.b32.xlu0 %v1540_v0, %s2121_s9 }
0x28b3   :  { %v1542_v3 = vpop.permute.xlu0 %1541 }
0x28b4   :  { %1943 = vmatmul.mubr.msk.bf16.vlgmr.msra.gmra.mrb[32].mxu1 %vm131_vm3, %v1542_v3 }
0x2987   :  { %v1580_v6 = vpop.f32.mrb[32].mxu1 }
0x2988   :  { %v1596_v7 = vadd.f32 %v1580_v6, %v2429_v57  ;;  %v1944_v9 = vpop.f32.mrb[33].mxu1  ;;  %v1587_v18 = vrot.slane %v1580_v6, 2 }
0x2989   :  { %v1583_v13 = vpop.f32.mrb[34].mxu1 }
0x298a   :  { %v1945_v14 = vpop.f32.mrb[35].mxu1  ;;  %v1598_v15 = vrot.slane %v1596_v7, 2  ;;  %v1589_v19 = vadd.f32 %v1587_v18, %v2446_v8 }
0x298c   :  { %1599 = vrot.lane.b32.xlu1 %v1598_v15, %s2116_s16  ;;  %v1749_v21 = vmul.f32 -1.442695, %v1589_v19 }
0x298e   :  { %2057 = vpow2.f32 %v1749_v21 }
0x2990   :  { %980 = vrot.lane.b32.xlu1 %v1734_v16, %s2122_s18 }
0x2998   :  { %v2058_v22 = vpop.eup %2057 }
0x2999   :  { %v1593_v24 = vadd.f32 1.0, %v2058_v22 }
0x299b   :  { %2059 = vrcp.f32 %v1593_v24 }
0x29a5   :  { %v2060_v57 = vpop.eup %2059 }
0x29a6   :  { %v1609_v38 = vsub.f32 1.0, %v2060_v57  ;;  %v1618_v63 = vmul.f32 %v2060_v57, %v1616_v32 }
0x29fe   :  { %v1600_v25 = vpop.permute.xlu1 %1599 }
0x29ff   :  { %v1602_v26 = vmul.f32 %v2060_v57, %v1600_v25 }
0x2a01   :  { %1604 = vrot.lane.b32.xlu0 %v1602_v26, %s2116_s16  ;;  %s2124_s16 = smov 5  }
0x2a02   :  { %v981_v27 = vpop.permute.xlu1 %980 }
0x2a03   :  { %v983_v28 = vmul.f32 %v981_v27, %v2452_v29  ;;  %v1079_v1 = vmul.f32 %v2471_v48, %v981_v27  ;;  %v1170_v30 = vmul.f32 %v2490_v20, %v981_v27  ;;  %v1261_v17 = vmul.f32 %v2509_v10, %v981_v27 }
0x2a04   :  { %v1438_v31 = vmul.f32 %v2545_v40, %v981_v27  ;;  %v1348_v29 = vmul.f32 %v2527_v11, %v981_v27  ;;  %v1529_v48 = vmul.f32 %v2558_v62, %v981_v27 }
0x2a05   :  { %985 = vrot.lane.b32.xlu1 %v983_v28, %s2121_s9 }
0x2a09   :  { %1081 = vrot.lane.b32.xlu1 %v1079_v1, %s2121_s9 }
0x2a0d   :  { %1172 = vrot.lane.b32.xlu1 %v1170_v30, %s2121_s9 }
0x2a11   :  { %1263 = vrot.lane.b32.xlu1 %v1261_v17, %s2121_s9 }
0x2a15   :  { %1440 = vrot.lane.b32.xlu1 %v1438_v31, %s2121_s9 }
0x2a19   :  { %1350 = vrot.lane.b32.xlu1 %v1348_v29, %s2121_s9 }
0x2a1d   :  { %1531 = vrot.lane.b32.xlu1 %v1529_v48, %s2121_s9 }
0x2a73   :  { %v1605_v33 = vpop.permute.xlu0 %1604 }
0x2a74   :  { %v1607_v20 = vadd.f32 %v1605_v33, %v2446_v8 }
0x2a76   :  { %2061 = vtanh.f32 %v1607_v20 }
0x2a77   :  { %v986_v10 = vpop.permute.xlu1 %985 }
0x2a78   :  { %v988_v37 = vsel %vm209_vm4, %v986_v10, 0.0 }
0x2a7b   :  { %v1082_v35 = vpop.permute.xlu1 %1081 }
0x2a7c   :  { %v1084_v46 = vsel %vm295_vm6, %v1082_v35, 0.0 }
0x2a7f   :  { %v1173_v36 = vpop.permute.xlu1 %1172 }
0x2a80   :  { %v2062_v34 = vpop.eup %2061  ;;  %v1175_v39 = vsel %vm382_vm5, %v1173_v36, 0.0 }
0x2a81   :  { %1611 = vrot.lane.b32.xlu0 %v2062_v34, %s2121_s9 }
0x2a83   :  { %v1264_v2 = vpop.permute.xlu1 %1263 }
0x2a84   :  { %v1266_v40 = vsel %vm469_vm7, %v1264_v2, 0.0 }
0x2a87   :  { %v1441_v11 = vpop.permute.xlu1 %1440 }
0x2a88   :  { %v1443_v5 = vsel %vm295_vm6, %v1441_v11, 0.0 }
0x2a8b   :  { %v1351_v12 = vpop.permute.xlu1 %1350 }
0x2a8c   :  { %v1353_v8 = vsel %vm209_vm4, %v1351_v12, 0.0 }
0x2a8f   :  { %v1532_v41 = vpop.permute.xlu1 %1531 }
0x2a90   :  { %v1534_v42 = vsel %vm382_vm5, %v1532_v41, 0.0 }
0x2aa0   :  { %989 = vadd.xlane.f32.xlu0 %v988_v37 }
0x2aa4   :  { %1176 = vadd.xlane.f32.xlu0 %v1175_v39 }
0x2aa8   :  { %1267 = vadd.xlane.f32.xlu0 %v1266_v40 }
0x2aac   :  { %1354 = vadd.xlane.f32.xlu0 %v1353_v8 }
0x2ab0   :  { %1444 = vadd.xlane.f32.xlu0 %v1443_v5 }
0x2ab4   :  { %1535 = vadd.xlane.f32.xlu0 %v1534_v42 }
0x2af3   :  { %v1612_v43 = vpop.permute.xlu0 %1611 }
0x2af4   :  { %v1614_v44 = vmul.f32 %v1612_v43, %v1609_v38 }
0x2af6   :  { %v1619_v59 = vadd.f32 %v1618_v63, %v1614_v44 }
0x2af8   :  { %v1620_v45 = vmul.f32 %v1619_v59, %v981_v27 }
0x2afa   :  { %1622 = vrot.lane.b32.xlu1 %v1620_v45, %s2121_s9 }
0x2b1e   :  { %1085 = vadd.xlane.f32.xlu1 %v1084_v46 }
0x2b2d   :  { %v990_v4 = vpop.xlane.xlu0 %989 }
0x2b2e   :  { %v997_v21 = vadd.f32 %v1735_v47, %v990_v4 }
0x2b31   :  { %v1177_v49 = vpop.xlane.xlu0 %1176 }
0x2b32   :  { %v1178_v50 = vadd.f32 %v1735_v47, %v1177_v49 }
0x2b34   :  { %v1635_v51 = vrot.slane %v1178_v50, 4 }
0x2b35   :  { %v1268_v52 = vpop.xlane.xlu0 %1267 }
0x2b36   :  { %1636 = vrot.lane.b32.xlu1 %v1635_v51, %s2123_s6  ;;  %v1269_v23 = vadd.f32 %v1735_v47, %v1268_v52 }
0x2b38   :  { %v1640_v3 = vrot.slane %v1269_v23, 6 }
0x2b39   :  { %v1355_v53 = vpop.xlane.xlu0 %1354 }
0x2b3a   :  { %v1356_v7 = vadd.f32 %v1735_v47, %v1355_v53 }
0x2b3d   :  { %v1445_v54 = vpop.xlane.xlu0 %1444 }
0x2b3e   :  { %v1446_v55 = vadd.f32 %v1735_v47, %v1445_v54 }
0x2b40   :  { %v1649_v56 = vrot.slane %v1446_v55, 2 }
0x2b41   :  { %v1536_v6 = vpop.xlane.xlu0 %1535 }
0x2b42   :  { %1650 = vrot.lane.b32.xlu1 %v1649_v56, %s2124_s16  ;;  %v1537_v9 = vadd.f32 %v1735_v47, %v1536_v6 }
0x2b44   :  { %v1654_v13 = vrot.slane %v1537_v9, 4 }
0x2b6c   :  { %v1623_v58 = vpop.permute.xlu1 %1622 }
0x2b6d   :  { %v1625_v60 = vsel %vm469_vm7, %v1623_v58, 0.0 }
0x2b6e   :  { %1626 = vadd.xlane.f32.xlu0 %v1625_v60 }
0x2bab   :  { %v1086_v61 = vpop.xlane.xlu1 %1085 }
0x2bac   :  { %v1087_v62 = vadd.f32 %v1735_v47, %v1086_v61 }
0x2bae   :  { %v1630_v0 = vrot.slane %v1087_v62, 2 }
0x2baf   :  { %v1637_v22 = vpop.permute.xlu1 %1636 }
0x2bb0   :  { %1631 = vrot.lane.b32.xlu0 %v1630_v0, %s2125_s19 }
0x2bb4   :  { %1641 = vrot.lane.b32.xlu0 %v1640_v3, %s2126_s20  ;;  %v1651_v27 = vpop.permute.xlu1 %1650 }
0x2bb8   :  { %1645 = vrot.lane.b32.xlu0 %v1356_v7, %s2117_s17  ;;  %s2129_s17 = smov [#allocation7]  }
0x2bb9   :  { %s1691_s22 = sshll.u32 %s2129_s17, 4  ;;  %s1692_s22 = int_to_ptr.vmem [resolvable:$true] %s1691_s22 }
0x2bba   :  { %s2089_s23 = scalar_lea.vmem %s1692_s22, 32  ;;  %p2094_p9 = scmp.lt.s32.totalorder %s1692_s22, %s1692_s22 }
0x2bbb   :  { %p2090_p8 = scmp.ne.s32.totalorder %s1692_s22, %s2089_s23  ;;  %p2095_p10 = scmp.lt.s32.totalorder %s2089_s23, %s2089_s23 }
0x2bbc   :  { %1655 = vrot.lane.b32.xlu0 %v1654_v13, %s2127_s21 }
0x2bbd   :  { %p2096_p11 = por %p2095_p10, %p2094_p9 }
0x2bbf   :  { %p2097_p12 = pnand %p2096_p11, %p2090_p8 }
0x2bfb   :  { %v1627_v14 = vpop.xlane.xlu0 %1626 }
0x2bfc   :  { %v1628_v15 = vadd.f32 %v1735_v47, %v1627_v14 }
0x2bfe   :  { %v1659_v16 = vrot.slane %v1628_v15, 6 }
0x2c00   :  { %1660 = vrot.lane.b32.xlu1 %v1659_v16, %s2128_s2 }
0x2c22   :  { %v1632_v18 = vpop.permute.xlu0 %1631 }
0x2c23   :  { %v1664_v24 = vsel %vm1663_vm8, %v997_v21, %v1632_v18 }
0x2c24   :  { %v1666_v25 = vsel %vm1665_vm9, %v1664_v24, %v1637_v22 }
0x2c26   :  { %v1642_v19 = vpop.permute.xlu0 %1641 }
0x2c27   :  { %v1668_v26 = vsel %vm1667_vm10, %v1666_v25, %v1642_v19 }
0x2c2a   :  { %v1646_v57 = vpop.permute.xlu0 %1645 }
0x2c2b   :  { %v1670_v28 = vsel %vm1669_vm11, %v1668_v26, %v1646_v57 }
0x2c2c   :  { %v1672_v30 = vsel %vm1671_vm12, %v1670_v28, %v1651_v27 }
0x2c2e   :  { %v1656_v1 = vpop.permute.xlu0 %1655 }
0x2c2f   :  { %v1674_v17 = vsel %vm1673_vm13, %v1672_v30, %v1656_v1 }
0x2c72   :  { %v1661_v31 = vpop.permute.xlu1 %1660 }
0x2c73   :  { %v1676_v29 = vsel %vm1675_vm14, %v1674_v17, %v1661_v31 }
0x2c74   :  { %v1750_v48 = vmul.f32 -1.442695, %v1676_v29 }
0x2c76   :  { %2063 = vpow2.f32 %v1750_v48 }
0x2c80   :  { %v2064_v33 = vpop.eup %2063 }
0x2c81   :  { %v1680_v20 = vadd.f32 1.0, %v2064_v33 }
0x2c83   :  { %2065 = vrcp.f32 %v1680_v20 }
0x2c8d   :  { %v2066_v34 = vpop.eup %2065 }
0x2c8e   :  { %1684 = vst.msk [vmem:[#allocation7] sm:$0x3] %vm1683_vm15, %v2066_v34 }
0x2c8f   :  { %2100 = shalt.err (!%p2097_p12)
}
0x2c90   :  { %s2101_s26 = scalar_lea.hbm %s2618_s8, 32 }
0x2c91   :  { %p2102_p13 = scmp.ne.s32.totalorder %s2618_s8, %s2101_s26  ;;  %p2105_p0 = scmp.lt.u32.totalorder %s2101_s26, %s2618_s8 }
0x2c93   :  { %p2107_p1 = pnand %p2105_p0, %p2102_p13 }
0x2c95   :  { %2110 = shalt.err (!%p2107_p1)
}
0x2c96   :  { %1694 = dma.vmem_to_hbm [thread:$0]  %s1692_s22, 32, %s2618_s8, [#allocation6]  }
0x2c97   :  { %2113 = dma.done.wait [#allocation6], 32  }
0x2c98   :  { %2114 = vsyncadd [#allocation6], 4294967264 }
0x2c99   :  { %1698 = vsyncpa [#allocation5], 1 }
0x2c9a   :  { %1699 = vsyncpa [#allocation6], 1 }

</bundles_post_ra>
